<compile_context>
chip_gen: v7x
topology: tpu7x:2x2x1
jax: 0.10.0
libtpu: 0.0.40
codegen_flags: <defaults>
</compile_context>

<pallas_src>
import functools

import jax
import jax.numpy as jnp
from jax.experimental import pallas as pl
from jax.experimental.pallas import tpu as pltpu

_LANE = 128
# Below physical VMEM on every generation (v5e/v6e: 128 MiB, v7x: 64 MiB), above the
# scoped defaults so the larger tiles below are allowed.
_VMEM_LIMIT_BYTES = 48 * 1024 * 1024


# --------------------------------------------------------------------------
# helpers
# --------------------------------------------------------------------------
def _round_up(n, m):
    return ((n + m - 1) // m) * m


def _pick_tile(n, cap):
    """Largest multiple of 128 that divides n and is <= cap (n is a multiple of 128)."""
    best = _LANE
    t = _LANE
    top = min(n, cap)
    while t <= top:
        if n % t == 0:
            best = t
        t += _LANE
    return best


def make_grid_t(S1, S2):
    """(2, S1*S2) grid points; same ordering as LowRank2d.get_grid(...).reshape(N, 2).T"""
    gx = jnp.linspace(0.0, 1.0, S1)
    gy = jnp.linspace(0.0, 1.0, S2)
    gxx, gyy = jnp.meshgrid(gx, gy, indexing="ij")
    return jnp.stack([gxx.reshape(-1), gyy.reshape(-1)], axis=0).astype(jnp.float32)


# --------------------------------------------------------------------------
# kernel 1: fused DenseNet([2, 64, 128, d_out], ReLU) for phi AND psi,
#           transposed layout: input (2, N), output (d_out, N)  (lane-dense in N)
# --------------------------------------------------------------------------
def _mlp_pair_kernel(pts_ref,
                     pw1_ref, pb1_ref, pw2_ref, pb2_ref, pw3_ref, pb3_ref,
                     qw1_ref, qb1_ref, qw2_ref, qb2_ref, qw3_ref, qb3_ref,
                     phi_ref, psi_ref):
    px = pts_ref[0:1, :]      # (1, tn)
    py = pts_ref[1:2, :]      # (1, tn)

    def mlp(w1, b1, w2, b2, w3, b3):
        # layer 1 has K=2: two VPU broadcast FMAs instead of a ~1%-utilized MXU matmul
        h = w1[:, 0:1] * px + w1[:, 1:2] * py + b1                       # (64, tn)
        h = jnp.maximum(h, 0.0)
        h = jnp.dot(w2, h, preferred_element_type=jnp.float32) + b2      # (128, tn)
        h = jnp.maximum(h, 0.0)
        return jnp.dot(w3, h, preferred_element_type=jnp.float32) + b3   # (d_out, tn)

    phi_ref[...] = mlp(pw1_ref[...], pb1_ref[...], pw2_ref[...], pb2_ref[...],
                       pw3_ref[...], pb3_ref[...]).astype(phi_ref.dtype)
    psi_ref[...] = mlp(qw1_ref[...], qb1_ref[...], qw2_ref[...], qb2_ref[...],
                       qw3_ref[...], qb3_ref[...]).astype(psi_ref.dtype)


def densenet_pair_apply(pts_t, params_phi, params_psi, *, tile_n):
    """pts_t: (2, N) -> (phi_t, psi_t), each (d_out, N) == MLP(pts).T"""
    _, N = pts_t.shape
    assert N % tile_n == 0

    def tp(p):  # tiny XLA transposes of the MLP weights (free compared to phi/psi)
        return (p["w1"].T, p["b1"].T, p["w2"].T, p["b2"].T, p["w3"].T, p["b3"].T)

    pw = tp(params_phi)
    qw = tp(params_psi)
    d_out = pw[4].shape[0]

    def full_spec(a):
        nd = a.ndim
        return pl.BlockSpec(a.shape, lambda i, _nd=nd: (0,) * _nd)

    out_spec = pl.BlockSpec((d_out, tile_n), lambda i: (0, i))
    return pl.pallas_call(
        _mlp_pair_kernel,
        out_shape=(jax.ShapeDtypeStruct((d_out, N), jnp.float32),
                   jax.ShapeDtypeStruct((d_out, N), jnp.float32)),
        grid_spec=pltpu.PrefetchScalarGridSpec(
            num_scalar_prefetch=0,
            grid=(N // tile_n,),
            in_specs=[pl.BlockSpec((2, tile_n), lambda i: (0, i))]
                     + [full_spec(a) for a in pw]
                     + [full_spec(a) for a in qw],
            out_specs=[out_spec, out_spec],
        ),
        compiler_params=pltpu.CompilerParams(
            dimension_semantics=("parallel",),
            vmem_limit_bytes=_VMEM_LIMIT_BYTES),
    )(pts_t, *pw, *qw)


# --------------------------------------------------------------------------
# kernel 2: A[i, b, o] = sum_n x[b, i, n] * phi[o, i, n]   (reduction over Nx)
# --------------------------------------------------------------------------
def _phi_contract_kernel(x_ref, phi_ref, a_ref, acc_ref):
    k = pl.program_id(0)

    @pl.when(k == 0)
    def _():
        acc_ref[...] = jnp.zeros_like(acc_ref)

    # i is a small "batch" dim (C_in): unroll it statically; each step is a plain
    # (B, tn) x (O, tn)^T NT matmul on the MXU, accumulated in f32 scratch.
    # (Accumulator is tiny -- I*B*O floats -- so its narrow lane width is irrelevant.)
    n_in = x_ref.shape[1]
    for i in range(n_in):
        acc_ref[i] += jax.lax.dot_general(
            x_ref[:, i, :], phi_ref[:, i, :],
            dimension_numbers=(((1,), (1,)), ((), ())),
            preferred_element_type=jnp.float32)          # (B, O)

    @pl.when(k == pl.num_programs(0) - 1)
    def _():
        a_ref[...] = acc_ref[...]


def _phi_contract(x_flat, phi_t, *, tile_n):
    B, I, N = x_flat.shape
    O = phi_t.shape[0]
    assert N % tile_n == 0
    # TODO(synk): the Nx-reduction grid runs on a single TensorCore; a v7x-specific
    # variant could additionally split over B (at the cost of re-streaming phi).
    return pl.pallas_call(
        _phi_contract_kernel,
        out_shape=jax.ShapeDtypeStruct((I, B, O), jnp.float32),
        grid_spec=pltpu.PrefetchScalarGridSpec(
            num_scalar_prefetch=0,
            grid=(N // tile_n,),
            in_specs=[pl.BlockSpec((B, I, tile_n), lambda k: (0, 0, k)),
                      pl.BlockSpec((O, I, tile_n), lambda k: (0, 0, k))],
            out_specs=pl.BlockSpec((I, B, O), lambda k: (0, 0, 0)),
            scratch_shapes=[pltpu.VMEM((I, B, O), jnp.float32)],
        ),
        compiler_params=pltpu.CompilerParams(
            dimension_semantics=("arbitrary",),
            vmem_limit_bytes=_VMEM_LIMIT_BYTES),
    )(x_flat, phi_t)


# --------------------------------------------------------------------------
# kernel 3: out[b, o, m] = inv_nx * sum_i A[o, b, i] * psi[o, i, m]   (tiled over Ny)
# --------------------------------------------------------------------------
def _psi_contract_kernel(a_ref, psi_ref, o_ref, *, inv_nx):
    n_out = a_ref.shape[0]
    for o in range(n_out):            # static unroll; out_channels is small
        res = jnp.dot(a_ref[o], psi_ref[o], preferred_element_type=jnp.float32)  # (B, tm)
        o_ref[:, o, :] = (res * inv_nx).astype(o_ref.dtype)


def _psi_contract(a_obi, psi_t, inv_nx, *, tile_m):
    O, B, I = a_obi.shape
    Ny = psi_t.shape[-1]
    assert Ny % tile_m == 0
    kernel = functools.partial(_psi_contract_kernel, inv_nx=inv_nx)
    return pl.pallas_call(
        kernel,
        out_shape=jax.ShapeDtypeStruct((B, O, Ny), jnp.float32),
        grid_spec=pltpu.PrefetchScalarGridSpec(
            num_scalar_prefetch=0,
            grid=(Ny // tile_m,),
            in_specs=[pl.BlockSpec((O, B, I), lambda j: (0, 0, 0)),
                      pl.BlockSpec((O, I, tile_m), lambda j: (0, 0, j))],
            out_specs=pl.BlockSpec((B, O, tile_m), lambda j: (0, 0, j)),
        ),
        compiler_params=pltpu.CompilerParams(
            dimension_semantics=("parallel",),
            vmem_limit_bytes=_VMEM_LIMIT_BYTES),
    )(a_obi, psi_t)


# --------------------------------------------------------------------------
# full forward
# --------------------------------------------------------------------------
def lowrank2d_forward(x, params_phi, params_psi, *, out_channels,
                      tile_n=1024, tile_m=1024, tile_mlp=512):
    B, C_in, S1, S2 = x.shape
    Nx = S1 * S2
    O, I = out_channels, C_in
    assert params_phi["w3"].shape[1] == O * I and params_psi["w3"].shape[1] == O * I
    # NOTE: the torch module defaults gridy := gridx, so Ny == Nx here.
    # TODO(synk): support an explicit `gridy` argument (separate psi evaluation points).

    Np = _round_up(Nx, _LANE)                 # pad the point axis to a lane multiple
    t_mlp = _pick_tile(Np, tile_mlp)
    t_n = _pick_tile(Np, tile_n)
    t_m = _pick_tile(Np, tile_m)

    pts_t = make_grid_t(S1, S2)               # (2, Nx)
    if Np != Nx:
        pts_t = jnp.pad(pts_t, ((0, 0), (0, Np - Nx)))

    # DenseNet evaluations, already in (O*I, N) layout -> the reshape below is free.
    phi_flat, psi_flat = densenet_pair_apply(pts_t, params_phi, params_psi, tile_n=t_mlp)
    phi_t = phi_flat.reshape(O, I, Np)        # phi_t[o, i, n] == torch phi_eval[n, o, i]
    psi_t = psi_flat.reshape(O, I, Np)

    x_flat = x.reshape(B, I, Nx).astype(jnp.float32)
    if Np != Nx:
        x_flat = jnp.pad(x_flat, ((0, 0), (0, 0), (0, Np - Nx)))   # zeros: no effect on A

    # stage 1: A[i, b, o] = sum_n x[b,i,n] phi[o,i,n]   (MXU, Nx-reduction grid)
    a_ibo = _phi_contract(x_flat, phi_t, tile_n=t_n)
    a_obi = jnp.transpose(a_ibo, (2, 1, 0))   # tiny (O*B*I floats)

    # stage 2: out[b,o,m] = (1/Nx) sum_i A[b,o,i] psi[o,i,m]   (MXU, Ny-tiled grid)
    out = _psi_contract(a_obi, psi_t, 1.0 / float(Nx), tile_m=t_m)
    return out[:, :, :Nx]


# --------------------------------------------------------------------------
# deterministic parameter init (PyTorch nn.Linear-style uniform bounds)
# --------------------------------------------------------------------------
def init_densenet_params(key, layers):
    params = {}
    keys = jax.random.split(key, 2 * (len(layers) - 1))
    for j in range(len(layers) - 1):
        fan_in = layers[j]
        bound = 1.0 / float(fan_in) ** 0.5
        w = jax.random.uniform(keys[2 * j], (layers[j], layers[j + 1]),
                               jnp.float32, -bound, bound)
        b = jax.random.uniform(keys[2 * j + 1], (1, layers[j + 1]),
                               jnp.float32, -bound, bound)
        params[f"w{j + 1}"] = w
        params[f"b{j + 1}"] = b
    return params


# --------------------------------------------------------------------------
# pure-JAX reference (mirrors the torch forward exactly)
# --------------------------------------------------------------------------
def lowrank2d_reference(x, params_phi, params_psi, *, out_channels):
    B, C_in, S1, S2 = x.shape
    Nx = S1 * S2
    gridpts = make_grid_t(S1, S2).T           # (Nx, 2)

    def mlp(pts, p):
        h = jnp.maximum(pts @ p["w1"] + p["b1"], 0.0)
        h = jnp.maximum(h @ p["w2"] + p["b2"], 0.0)
        return h @ p["w3"] + p["b3"]

    phi = mlp(gridpts, params_phi).reshape(Nx, out_channels, C_in)
    psi = mlp(gridpts, params_psi).reshape(Nx, out_channels, C_in)
    xr = x.reshape(B, C_in, Nx)
    return jnp.einsum("noi,bin,moi->bom", phi, xr, psi) / Nx


if __name__ == "__main__":
    B, C_in, C_out, S1, S2 = 2, 4, 4, 16, 16

    key = jax.random.PRNGKey(0)
    k_x, k_phi, k_psi = jax.random.split(key, 3)

    x = jax.random.normal(k_x, (B, C_in, S1, S2), dtype=jnp.float32)
    layers = [2, 64, 128, C_in * C_out]
    params_phi = init_densenet_params(k_phi, layers)
    params_psi = init_densenet_params(k_psi, layers)

    out = lowrank2d_forward(x, params_phi, params_psi, out_channels=C_out)
    out = jax.block_until_ready(out)

    ref = lowrank2d_reference(x, params_phi, params_psi, out_channels=C_out)
    assert out.shape == (B, C_out, S1 * S2), out.shape
    # tolerance covers possible bf16-pass decomposition of f32 MXU matmuls in-kernel
    assert jnp.allclose(out, ref, rtol=2e-3, atol=2e-3), \
        f"max abs err {jnp.max(jnp.abs(out - ref))}"

    print("KERNEL_OK")
</pallas_src>

<mosaic_0001>
module attributes {stable_mosaic.version = 11 : i64} {
  func.func @_mlp_pair_kernel(%arg0: i32, %arg1: memref<2x256xf32, #tpu.memory_space<vmem>>, %arg2: memref<64x2xf32, #tpu.memory_space<vmem>>, %arg3: memref<64x1xf32, #tpu.memory_space<vmem>>, %arg4: memref<128x64xf32, #tpu.memory_space<vmem>>, %arg5: memref<128x1xf32, #tpu.memory_space<vmem>>, %arg6: memref<16x128xf32, #tpu.memory_space<vmem>>, %arg7: memref<16x1xf32, #tpu.memory_space<vmem>>, %arg8: memref<64x2xf32, #tpu.memory_space<vmem>>, %arg9: memref<64x1xf32, #tpu.memory_space<vmem>>, %arg10: memref<128x64xf32, #tpu.memory_space<vmem>>, %arg11: memref<128x1xf32, #tpu.memory_space<vmem>>, %arg12: memref<16x128xf32, #tpu.memory_space<vmem>>, %arg13: memref<16x1xf32, #tpu.memory_space<vmem>>, %arg14: memref<16x256xf32, #tpu.memory_space<vmem>>, %arg15: memref<16x256xf32, #tpu.memory_space<vmem>>) attributes {dimension_semantics = [#tpu.dimension_semantics<parallel>], iteration_bounds = array<i64: 1>, scalar_prefetch = 0 : i64, scratch_operands = 0 : i64, tpu.core_type = #tpu.core_type<tc>, window_params = [{transform_indices = @transform_0, window_bounds = array<i64: 2, 256>}, {pipeline_mode = #tpu.pipeline_mode<synchronous>, transform_indices = @transform_1, window_bounds = array<i64: 64, 2>}, {pipeline_mode = #tpu.pipeline_mode<synchronous>, transform_indices = @transform_2, window_bounds = array<i64: 64, 1>}, {pipeline_mode = #tpu.pipeline_mode<synchronous>, transform_indices = @transform_3, window_bounds = array<i64: 128, 64>}, {pipeline_mode = #tpu.pipeline_mode<synchronous>, transform_indices = @transform_4, window_bounds = array<i64: 128, 1>}, {pipeline_mode = #tpu.pipeline_mode<synchronous>, transform_indices = @transform_5, window_bounds = array<i64: 16, 128>}, {pipeline_mode = #tpu.pipeline_mode<synchronous>, transform_indices = @transform_6, window_bounds = array<i64: 16, 1>}, {pipeline_mode = #tpu.pipeline_mode<synchronous>, transform_indices = @transform_7, window_bounds = array<i64: 64, 2>}, {pipeline_mode = #tpu.pipeline_mode<synchronous>, transform_indices = @transform_8, window_bounds = array<i64: 64, 1>}, {pipeline_mode = #tpu.pipeline_mode<synchronous>, transform_indices = @transform_9, window_bounds = array<i64: 128, 64>}, {pipeline_mode = #tpu.pipeline_mode<synchronous>, transform_indices = @transform_10, window_bounds = array<i64: 128, 1>}, {pipeline_mode = #tpu.pipeline_mode<synchronous>, transform_indices = @transform_11, window_bounds = array<i64: 16, 128>}, {pipeline_mode = #tpu.pipeline_mode<synchronous>, transform_indices = @transform_12, window_bounds = array<i64: 16, 1>}, {transform_indices = @transform_13, window_bounds = array<i64: 16, 256>}, {transform_indices = @transform_14, window_bounds = array<i64: 16, 256>}]} {
    %c0 = arith.constant 0 : index
    %c0_0 = arith.constant 0 : index
    %0 = vector.load %arg1[%c0, %c0_0] : memref<2x256xf32, #tpu.memory_space<vmem>>, vector<1x256xf32>
    %c1 = arith.constant 1 : index
    %c0_1 = arith.constant 0 : index
    %1 = vector.load %arg1[%c1, %c0_1] : memref<2x256xf32, #tpu.memory_space<vmem>>, vector<1x256xf32>
    %c0_2 = arith.constant 0 : index
    %c0_3 = arith.constant 0 : index
    %2 = vector.load %arg2[%c0_2, %c0_3] : memref<64x2xf32, #tpu.memory_space<vmem>>, vector<64x2xf32>
    %c0_4 = arith.constant 0 : index
    %c0_5 = arith.constant 0 : index
    %3 = vector.load %arg3[%c0_4, %c0_5] : memref<64x1xf32, #tpu.memory_space<vmem>>, vector<64x1xf32>
    %c0_6 = arith.constant 0 : index
    %c0_7 = arith.constant 0 : index
    %4 = vector.load %arg4[%c0_6, %c0_7] : memref<128x64xf32, #tpu.memory_space<vmem>>, vector<128x64xf32>
    %c0_8 = arith.constant 0 : index
    %c0_9 = arith.constant 0 : index
    %5 = vector.load %arg5[%c0_8, %c0_9] : memref<128x1xf32, #tpu.memory_space<vmem>>, vector<128x1xf32>
    %c0_10 = arith.constant 0 : index
    %c0_11 = arith.constant 0 : index
    %6 = vector.load %arg6[%c0_10, %c0_11] : memref<16x128xf32, #tpu.memory_space<vmem>>, vector<16x128xf32>
    %c0_12 = arith.constant 0 : index
    %c0_13 = arith.constant 0 : index
    %7 = vector.load %arg7[%c0_12, %c0_13] : memref<16x1xf32, #tpu.memory_space<vmem>>, vector<16x1xf32>
    %8 = vector.extract_strided_slice %2 {offsets = [0, 0], sizes = [64, 1], strides = [1, 1]} : vector<64x2xf32> to vector<64x1xf32>
    %9 = vector.broadcast %8 : vector<64x1xf32> to vector<64x256xf32>
    %10 = vector.broadcast %0 : vector<1x256xf32> to vector<64x256xf32>
    %11 = arith.mulf %9, %10 : vector<64x256xf32>
    %12 = vector.extract_strided_slice %2 {offsets = [0, 1], sizes = [64, 1], strides = [1, 1]} : vector<64x2xf32> to vector<64x1xf32>
    %13 = vector.broadcast %12 : vector<64x1xf32> to vector<64x256xf32>
    %14 = vector.broadcast %1 : vector<1x256xf32> to vector<64x256xf32>
    %15 = arith.mulf %13, %14 : vector<64x256xf32>
    %16 = arith.addf %11, %15 : vector<64x256xf32>
    %17 = vector.broadcast %3 : vector<64x1xf32> to vector<64x256xf32>
    %18 = arith.addf %16, %17 : vector<64x256xf32>
    %cst = arith.constant 0.000000e+00 : f32
    %19 = vector.broadcast %cst : f32 to vector<64x256xf32>
    %20 = arith.maximumf %18, %19 : vector<64x256xf32>
    %cst_14 = arith.constant dense<0.000000e+00> : vector<128x256xf32>
    %21 = tpu.matmul %4, %20, %cst_14 {dimension_numbers = #tpu.dot_dimension_numbers<[1], [0], [0], [1], [0, 0, 1, 1], [], []>} : vector<128x64xf32>, vector<64x256xf32>, vector<128x256xf32> -> vector<128x256xf32>
    %22 = vector.broadcast %5 : vector<128x1xf32> to vector<128x256xf32>
    %23 = arith.addf %21, %22 : vector<128x256xf32>
    %cst_15 = arith.constant 0.000000e+00 : f32
    %24 = vector.broadcast %cst_15 : f32 to vector<128x256xf32>
    %25 = arith.maximumf %23, %24 : vector<128x256xf32>
    %cst_16 = arith.constant dense<0.000000e+00> : vector<16x256xf32>
    %26 = tpu.matmul %6, %25, %cst_16 {dimension_numbers = #tpu.dot_dimension_numbers<[1], [0], [0], [1], [0, 0, 1, 1], [], []>} : vector<16x128xf32>, vector<128x256xf32>, vector<16x256xf32> -> vector<16x256xf32>
    %27 = vector.broadcast %7 : vector<16x1xf32> to vector<16x256xf32>
    %28 = arith.addf %26, %27 : vector<16x256xf32>
    %c0_17 = arith.constant 0 : index
    %c0_18 = arith.constant 0 : index
    %29 = vector.load %arg14[%c0_17, %c0_18] : memref<16x256xf32, #tpu.memory_space<vmem>>, vector<16x256xf32>
    tpu.vector_store %arg14[%c0_17, %c0_18], %28 {strides = array<i32>} : memref<16x256xf32, #tpu.memory_space<vmem>>, vector<16x256xf32>,
    %c0_19 = arith.constant 0 : index
    %c0_20 = arith.constant 0 : index
    %30 = vector.load %arg8[%c0_19, %c0_20] : memref<64x2xf32, #tpu.memory_space<vmem>>, vector<64x2xf32>
    %c0_21 = arith.constant 0 : index
    %c0_22 = arith.constant 0 : index
    %31 = vector.load %arg9[%c0_21, %c0_22] : memref<64x1xf32, #tpu.memory_space<vmem>>, vector<64x1xf32>
    %c0_23 = arith.constant 0 : index
    %c0_24 = arith.constant 0 : index
    %32 = vector.load %arg10[%c0_23, %c0_24] : memref<128x64xf32, #tpu.memory_space<vmem>>, vector<128x64xf32>
    %c0_25 = arith.constant 0 : index
    %c0_26 = arith.constant 0 : index
    %33 = vector.load %arg11[%c0_25, %c0_26] : memref<128x1xf32, #tpu.memory_space<vmem>>, vector<128x1xf32>
    %c0_27 = arith.constant 0 : index
    %c0_28 = arith.constant 0 : index
    %34 = vector.load %arg12[%c0_27, %c0_28] : memref<16x128xf32, #tpu.memory_space<vmem>>, vector<16x128xf32>
    %c0_29 = arith.constant 0 : index
    %c0_30 = arith.constant 0 : index
    %35 = vector.load %arg13[%c0_29, %c0_30] : memref<16x1xf32, #tpu.memory_space<vmem>>, vector<16x1xf32>
    %36 = vector.extract_strided_slice %30 {offsets = [0, 0], sizes = [64, 1], strides = [1, 1]} : vector<64x2xf32> to vector<64x1xf32>
    %37 = vector.broadcast %36 : vector<64x1xf32> to vector<64x256xf32>
    %38 = vector.broadcast %0 : vector<1x256xf32> to vector<64x256xf32>
    %39 = arith.mulf %37, %38 : vector<64x256xf32>
    %40 = vector.extract_strided_slice %30 {offsets = [0, 1], sizes = [64, 1], strides = [1, 1]} : vector<64x2xf32> to vector<64x1xf32>
    %41 = vector.broadcast %40 : vector<64x1xf32> to vector<64x256xf32>
    %42 = vector.broadcast %1 : vector<1x256xf32> to vector<64x256xf32>
    %43 = arith.mulf %41, %42 : vector<64x256xf32>
    %44 = arith.addf %39, %43 : vector<64x256xf32>
    %45 = vector.broadcast %31 : vector<64x1xf32> to vector<64x256xf32>
    %46 = arith.addf %44, %45 : vector<64x256xf32>
    %cst_31 = arith.constant 0.000000e+00 : f32
    %47 = vector.broadcast %cst_31 : f32 to vector<64x256xf32>
    %48 = arith.maximumf %46, %47 : vector<64x256xf32>
    %cst_32 = arith.constant dense<0.000000e+00> : vector<128x256xf32>
    %49 = tpu.matmul %32, %48, %cst_32 {dimension_numbers = #tpu.dot_dimension_numbers<[1], [0], [0], [1], [0, 0, 1, 1], [], []>} : vector<128x64xf32>, vector<64x256xf32>, vector<128x256xf32> -> vector<128x256xf32>
    %50 = vector.broadcast %33 : vector<128x1xf32> to vector<128x256xf32>
    %51 = arith.addf %49, %50 : vector<128x256xf32>
    %cst_33 = arith.constant 0.000000e+00 : f32
    %52 = vector.broadcast %cst_33 : f32 to vector<128x256xf32>
    %53 = arith.maximumf %51, %52 : vector<128x256xf32>
    %cst_34 = arith.constant dense<0.000000e+00> : vector<16x256xf32>
    %54 = tpu.matmul %34, %53, %cst_34 {dimension_numbers = #tpu.dot_dimension_numbers<[1], [0], [0], [1], [0, 0, 1, 1], [], []>} : vector<16x128xf32>, vector<128x256xf32>, vector<16x256xf32> -> vector<16x256xf32>
    %55 = vector.broadcast %35 : vector<16x1xf32> to vector<16x256xf32>
    %56 = arith.addf %54, %55 : vector<16x256xf32>
    %c0_35 = arith.constant 0 : index
    %c0_36 = arith.constant 0 : index
    %57 = vector.load %arg15[%c0_35, %c0_36] : memref<16x256xf32, #tpu.memory_space<vmem>>, vector<16x256xf32>
    tpu.vector_store %arg15[%c0_35, %c0_36], %56 {strides = array<i32>} : memref<16x256xf32, #tpu.memory_space<vmem>>, vector<16x256xf32>,
    return
  }
  func.func @transform_0(%arg0: i32) -> (i32, i32) {
    %c0_i32 = arith.constant 0 : i32
    %c0_i32_0 = arith.constant 0 : i32
    return %c0_i32, %arg0 : i32, i32
  }
  func.func @transform_1(%arg0: i32) -> (i32, i32) {
    %c0_i32 = arith.constant 0 : i32
    %c0_i32_0 = arith.constant 0 : i32
    %c0_i32_1 = arith.constant 0 : i32
    return %c0_i32, %c0_i32_0 : i32, i32
  }
  func.func @transform_2(%arg0: i32) -> (i32, i32) {
    %c0_i32 = arith.constant 0 : i32
    %c0_i32_0 = arith.constant 0 : i32
    %c0_i32_1 = arith.constant 0 : i32
    return %c0_i32, %c0_i32_0 : i32, i32
  }
  func.func @transform_3(%arg0: i32) -> (i32, i32) {
    %c0_i32 = arith.constant 0 : i32
    %c0_i32_0 = arith.constant 0 : i32
    %c0_i32_1 = arith.constant 0 : i32
    return %c0_i32, %c0_i32_0 : i32, i32
  }
  func.func @transform_4(%arg0: i32) -> (i32, i32) {
    %c0_i32 = arith.constant 0 : i32
    %c0_i32_0 = arith.constant 0 : i32
    %c0_i32_1 = arith.constant 0 : i32
    return %c0_i32, %c0_i32_0 : i32, i32
  }
  func.func @transform_5(%arg0: i32) -> (i32, i32) {
    %c0_i32 = arith.constant 0 : i32
    %c0_i32_0 = arith.constant 0 : i32
    %c0_i32_1 = arith.constant 0 : i32
    return %c0_i32, %c0_i32_0 : i32, i32
  }
  func.func @transform_6(%arg0: i32) -> (i32, i32) {
    %c0_i32 = arith.constant 0 : i32
    %c0_i32_0 = arith.constant 0 : i32
    %c0_i32_1 = arith.constant 0 : i32
    return %c0_i32, %c0_i32_0 : i32, i32
  }
  func.func @transform_7(%arg0: i32) -> (i32, i32) {
    %c0_i32 = arith.constant 0 : i32
    %c0_i32_0 = arith.constant 0 : i32
    %c0_i32_1 = arith.constant 0 : i32
    return %c0_i32, %c0_i32_0 : i32, i32
  }
  func.func @transform_8(%arg0: i32) -> (i32, i32) {
    %c0_i32 = arith.constant 0 : i32
    %c0_i32_0 = arith.constant 0 : i32
    %c0_i32_1 = arith.constant 0 : i32
    return %c0_i32, %c0_i32_0 : i32, i32
  }
  func.func @transform_9(%arg0: i32) -> (i32, i32) {
    %c0_i32 = arith.constant 0 : i32
    %c0_i32_0 = arith.constant 0 : i32
    %c0_i32_1 = arith.constant 0 : i32
    return %c0_i32, %c0_i32_0 : i32, i32
  }
  func.func @transform_10(%arg0: i32) -> (i32, i32) {
    %c0_i32 = arith.constant 0 : i32
    %c0_i32_0 = arith.constant 0 : i32
    %c0_i32_1 = arith.constant 0 : i32
    return %c0_i32, %c0_i32_0 : i32, i32
  }
  func.func @transform_11(%arg0: i32) -> (i32, i32) {
    %c0_i32 = arith.constant 0 : i32
    %c0_i32_0 = arith.constant 0 : i32
    %c0_i32_1 = arith.constant 0 : i32
    return %c0_i32, %c0_i32_0 : i32, i32
  }
  func.func @transform_12(%arg0: i32) -> (i32, i32) {
    %c0_i32 = arith.constant 0 : i32
    %c0_i32_0 = arith.constant 0 : i32
    %c0_i32_1 = arith.constant 0 : i32
    return %c0_i32, %c0_i32_0 : i32, i32
  }
  func.func @transform_13(%arg0: i32) -> (i32, i32) {
    %c0_i32 = arith.constant 0 : i32
    %c0_i32_0 = arith.constant 0 : i32
    return %c0_i32, %arg0 : i32, i32
  }
  func.func @transform_14(%arg0: i32) -> (i32, i32) {
    %c0_i32 = arith.constant 0 : i32
    %c0_i32_0 = arith.constant 0 : i32
    return %c0_i32, %arg0 : i32, i32
  }
}

</mosaic_0001>

<bundles_post_ra>
// kernel: tpu_custom_call.1
= control target key start
LH: loop header
LB: loop body
LE: loop exit
PB: predicated region body
PF: predicated region fallthrough
CT: control target
= control target key end

     0   :  { %20 = vsyncpa [#allocation3], 0  ;;  %v1622_v2 = vmov 1   ;;  %v1623_v7 = vmov 0   ;;  %s2393_s0 = inlined_call_operand.vmem [shape: f32[2,256], index: 0, kind: input, shape index: {}]   ;;  %s2394_s1 = inlined_call_operand.vmem [shape: f32[64,2], index: 1, kind: input, shape index: {}]   ;;  %s2395_s2 = inlined_call_operand.vmem [shape: f32[64,1], index: 2, kind: input, shape index: {}]   ;;  %s2396_s3 = inlined_call_operand.vmem [shape: f32[128,64], index: 3, kind: input, shape index: {}]   ;;  %s2397_s4 = inlined_call_operand.vmem [shape: f32[128,1], index: 4, kind: input, shape index: {}]   ;;  %s2398_s5 = inlined_call_operand.vmem [shape: f32[16,128], index: 5, kind: input, shape index: {}]   ;;  %s2399_s6 = inlined_call_operand.vmem [shape: f32[16,1], index: 6, kind: input, shape index: {}]   ;;  %s2400_s7 = inlined_call_operand.vmem [shape: f32[64,2], index: 7, kind: input, shape index: {}]   ;;  %s2401_s8 = inlined_call_operand.vmem [shape: f32[64,1], index: 8, kind: input, shape index: {}]   ;;  %s2402_s9 = inlined_call_operand.vmem [shape: f32[128,64], index: 9, kind: input, shape index: {}]   ;;  %s2403_s10 = inlined_call_operand.vmem [shape: f32[128,1], index: 10, kind: input, shape index: {}]   ;;  %s2404_s11 = inlined_call_operand.vmem [shape: f32[16,128], index: 11, kind: input, shape index: {}]   ;;  %s2405_s12 = inlined_call_operand.vmem [shape: f32[16,1], index: 12, kind: input, shape index: {}]   ;;  %s2406_s13 = inlined_call_operand.hbm [shape: f32[16,256], index: 13, kind: output, shape index: {0}]   ;;  %s2407_s14 = inlined_call_operand.hbm [shape: f32[16,256], index: 14, kind: output, shape index: {1}]  }
   0x1   :  { %v53_v0 = vld [vmem:[%s2394_s1 + $0x10] sm:$0xff]  ;;  %v51_v1 = vld [vmem:[%s2394_s1] sm:$0xff]  ;;  %1556 = vset.pattern.permute.xlu0 %v1622_v2  ;;  %1554 = vset.pattern.permute.xlu1 %v1622_v2  ;;  %v52_v4 = vld [vmem:[%s2394_s1 + $0x8] sm:$0xff] }
   0x2   :  { %179 = vperm.xlu0 %1556, %v53_v0   ;;  %171 = vperm.xlu1 %1554, %v51_v1   ;;  %v55_v3 = vld [vmem:[%s2394_s1 + $0x20] sm:$0xff]  ;;  %v57_v5 = vld [vmem:[%s2394_s1 + $0x30] sm:$0xff]  ;;  %v54_v6 = vld [vmem:[%s2394_s1 + $0x18] sm:$0xff] }
   0x6   :  { %187 = vperm.xlu0 %1556, %v55_v3   ;;  %175 = vperm.xlu1 %1554, %v52_v4  }
   0xa   :  { %195 = vperm.xlu0 %1556, %v57_v5   ;;  %1555 = vset.pattern.permute.xlu1 %v1623_v7 }
   0xb   :  { %120 = vperm.xlu1 %1555, %v54_v6  }
   0xc   :  { %21 = vsyncpa [#allocation5], 0  ;;  %v59_v8 = vld [vmem:[%s2395_s2] sm:$0xff]  ;;  %v60_v9 = vld [vmem:[%s2395_s2 + $0x8] sm:$0xff]  ;;  %v1624_v31 = vmov 0.0   ;;  %v144_v46 = vlaneseq  ;;  %vm397_vm0 = vcmask 523264  }
   0xd   :  { %v56_v10 = vld [vmem:[%s2394_s1 + $0x28] sm:$0xff]  ;;  %v62_v11 = vld [vmem:[%s2395_s2 + $0x18] sm:$0xff]  ;;  %v61_v13 = vld [vmem:[%s2395_s2 + $0x10] sm:$0xff]  ;;  %510 = vmatprep.mubr.f32.mxu0 %v1624_v31  ;;  %713 = vmatprep.mubr.f32.mxu1 %v1624_v31 }
   0xe   :  { %1561 = vset.pattern.permute.xlu0 %v1623_v7  ;;  %v64_v12 = vld [vmem:[%s2395_s2 + $0x28] sm:$0xff]  ;;  %v730_v14 = vld [vmem:[%s2400_s7] sm:$0xff]  ;;  %v58_v16 = vld [vmem:[%s2394_s1 + $0x38] sm:$0xff]  ;;  %v145_v50 = vshrl.u32 %v144_v46, 7 }
   0xf   :  { %105 = vperm.xlu0 %1561, %v51_v1   ;;  %1557 = vset.pattern.permute.xlu1 %v1622_v2  ;;  %v734_v15 = vld [vmem:[%s2400_s7 + $0x20] sm:$0xff]  ;;  %v1761_v17 = vld [vmem:[%s2400_s7 + $0x30] sm:$0xff]  ;;  %v66_v23 = vld [vmem:[%s2395_s2 + $0x38] sm:$0xff] }
  0x10   :  { %183 = vperm.xlu1 %1557, %v54_v6   ;;  %v83_v18 = vld [vmem:[%s2397_s4] sm:$0xff]  ;;  %v85_v20 = vld [vmem:[%s2397_s4 + $0x10] sm:$0xff]  ;;  %v84_v25 = vld [vmem:[%s2397_s4 + $0x8] sm:$0xff]  ;;  %v146_v55 = vsub.s32 0, %v145_v50  ;;  %v150_v56 = vsub.s32 1, %v145_v50 }
  0x11   :  { %v63_v19 = vld [vmem:[%s2395_s2 + $0x20] sm:$0xff]  ;;  %v65_v21 = vld [vmem:[%s2395_s2 + $0x30] sm:$0xff]  ;;  %v86_v27 = vld [vmem:[%s2397_s4 + $0x18] sm:$0xff]  ;;  %s1625_s2 = smov [#allocation2]  }
  0x12   :  { %v87_v22 = vld [vmem:[%s2397_s4 + $0x20] sm:$0xff]  ;;  %v89_v24 = vld [vmem:[%s2397_s4 + $0x30] sm:$0xff]  ;;  %v88_v29 = vld [vmem:[%s2397_s4 + $0x28] sm:$0xff]  ;;  %s1391_s15 = sshll.u32 %s1625_s2, 4  ;;  %s1392_s15 = int_to_ptr.vmem [resolvable:$true] %s1391_s15 }
  0x13   :  { %110 = vperm.xlu0 %1561, %v52_v4   ;;  %v91_v26 = vld [vmem:[%s2397_s4 + $0x40] sm:$0xff]  ;;  %v93_v28 = vld [vmem:[%s2397_s4 + $0x50] sm:$0xff]  ;;  %v90_v32 = vld [vmem:[%s2397_s4 + $0x38] sm:$0xff]  ;;  %s1574_s16 = scalar_lea.vmem %s1392_s15, 512  ;;  %p1579_p1 = scmp.lt.s32.totalorder %s1392_s15, %s1392_s15 }
  0x14   :  { %1558 = vset.pattern.permute.xlu1 %v1623_v7  ;;  %v95_v30 = vld [vmem:[%s2397_s4 + $0x60] sm:$0xff]  ;;  %v97_v33 = vld [vmem:[%s2397_s4 + $0x70] sm:$0xff]  ;;  %v92_v34 = vld [vmem:[%s2397_s4 + $0x48] sm:$0xff]  ;;  %p1575_p0 = scmp.ne.s32.totalorder %s1392_s15, %s1574_s16  ;;  %p1580_p2 = scmp.lt.s32.totalorder %s1574_s16, %s1574_s16 }
  0x15   :  { %247 = vperm.xlu1 %1558, %v59_v8   ;;  %v94_v35 = vld [vmem:[%s2397_s4 + $0x58] sm:$0xff]  ;;  %v96_v37 = vld [vmem:[%s2397_s4 + $0x68] sm:$0xff]  ;;  %v738_v38 = vld [vmem:[%s2401_s8] sm:$0xff] }
  0x16   :  { %v733_v36 = vld [vmem:[%s2400_s7 + $0x18] sm:$0xff]  ;;  %v731_v40 = vld [vmem:[%s2400_s7 + $0x8] sm:$0xff]  ;;  %v732_v41 = vld [vmem:[%s2400_s7 + $0x10] sm:$0xff]  ;;  %p1581_p3 = por %p1580_p2, %p1579_p1 }
  0x17   :  { %115 = vperm.xlu0 %1561, %v53_v0   ;;  %v98_v39 = vld [vmem:[%s2397_s4 + $0x78] sm:$0xff]  ;;  %v739_v42 = vld [vmem:[%s2401_s8 + $0x8] sm:$0xff]  ;;  %v740_v54 = vld [vmem:[%s2401_s8 + $0x10] sm:$0xff] }
  0x18   :  { %v735_v45 = vld [vmem:[%s2400_s7 + $0x28] sm:$0xff]  ;;  %v741_v49 = vld [vmem:[%s2401_s8 + $0x18] sm:$0xff]  ;;  %v762_v57 = vld [vmem:[%s2403_s10] sm:$0xff]  ;;  %p1582_p4 = pnand %p1581_p3, %p1575_p0 }
  0x19   :  { %125 = vperm.xlu1 %1558, %v55_v3   ;;  %v743_v52 = vld [vmem:[%s2401_s8 + $0x28] sm:$0xff]  ;;  %v1418_v58 = vld [vmem:[%s2393_s0 + $0x1] ss:$2 sm:$0x3]  ;;  %v764_v3 = vld [vmem:[%s2403_s10 + $0x10] sm:$0xff] }
  0x1a   :  { %v48_v59 = vld [vmem:[%s2393_s0] ss:$2 sm:$0x3]  ;;  %v1876_v62 = vrot.slane %v1418_v58, %v146_v55  ;;  %v1878_v63 = vrot.slane %v1418_v58, %v150_v56 }
  0x1b   :  { %252 = vperm.xlu0 %1561, %v60_v9   ;;  %v1880_v0 = vrot.slane %v48_v59, %v146_v55  ;;  %v1882_v1 = vrot.slane %v48_v59, %v150_v56  ;;  %v737_v9 = vld [vmem:[%s2400_s7 + $0x38] sm:$0xff] }
  0x1c   :  { %v745_v59 = vld [vmem:[%s2401_s8 + $0x38] sm:$0xff] }
  0x1d   :  { %130 = vperm.xlu1 %1558, %v56_v10  }
  0x1f   :  { %262 = vperm.xlu0 %1561, %v62_v11  }
  0x21   :  { %1559 = vset.pattern.permute.xlu1 %v1622_v2 }
  0x22   :  { %191 = vperm.xlu1 %1559, %v56_v10  }
  0x23   :  { %272 = vperm.xlu0 %1561, %v64_v12  }
  0x26   :  { %1560 = vset.pattern.permute.xlu1 %v1623_v7 }
  0x27   :  { %257 = vperm.xlu1 %1560, %v61_v13   ;;  %1564 = vset.pattern.permute.xlu0 %v1622_v2 }
  0x28   :  { %839 = vperm.xlu0 %1564, %v730_v14  }
  0x2b   :  { %135 = vperm.xlu1 %1560, %v57_v5  }
  0x2c   :  { %855 = vperm.xlu0 %1564, %v734_v15  }
  0x2f   :  { %140 = vperm.xlu1 %1560, %v58_v16  }
  0x30   :  { %863 = vperm.xlu0 %1564, %v1761_v17  }
  0x33   :  { %1562 = vset.pattern.permute.xlu1 %v1622_v2 }
  0x34   :  { %199 = vperm.xlu1 %1562, %v58_v16   ;;  %1571 = vset.pattern.permute.xlu0 %v1623_v7 }
  0x35   :  { %319 = vperm.xlu0 %1571, %v83_v18  }
  0x38   :  { %1563 = vset.pattern.permute.xlu1 %v1623_v7 }
  0x39   :  { %267 = vperm.xlu1 %1563, %v63_v19   ;;  %329 = vperm.xlu0 %1571, %v85_v20  }
  0x3d   :  { %277 = vperm.xlu1 %1563, %v65_v21   ;;  %339 = vperm.xlu0 %1571, %v87_v22  }
  0x41   :  { %282 = vperm.xlu1 %1563, %v66_v23   ;;  %349 = vperm.xlu0 %1571, %v89_v24  }
  0x45   :  { %324 = vperm.xlu1 %1563, %v84_v25   ;;  %359 = vperm.xlu0 %1571, %v91_v26   ;;  %v768_v25 = vld [vmem:[%s2403_s10 + $0x30] sm:$0xff] }
  0x49   :  { %334 = vperm.xlu1 %1563, %v86_v27   ;;  %369 = vperm.xlu0 %1571, %v93_v28  }
  0x4d   :  { %344 = vperm.xlu1 %1563, %v88_v29   ;;  %379 = vperm.xlu0 %1571, %v95_v30  }
  0x51   :  { %354 = vperm.xlu1 %1563, %v90_v32   ;;  %389 = vperm.xlu0 %1571, %v97_v33  }
  0x55   :  { %364 = vperm.xlu1 %1563, %v92_v34   ;;  %784 = vperm.xlu0 %1571, %v730_v14   ;;  %v766_v14 = vld [vmem:[%s2403_s10 + $0x20] sm:$0xff] }
  0x59   :  { %374 = vperm.xlu1 %1563, %v94_v35   ;;  %799 = vperm.xlu0 %1571, %v733_v36   ;;  %v770_v35 = vld [vmem:[%s2403_s10 + $0x40] sm:$0xff] }
  0x5d   :  { %384 = vperm.xlu1 %1563, %v96_v37   ;;  %904 = vperm.xlu0 %1571, %v738_v38  }
  0x61   :  { %394 = vperm.xlu1 %1563, %v98_v39   ;;  %804 = vperm.xlu0 %1571, %v734_v15  }
  0x65   :  { %789 = vperm.xlu1 %1563, %v731_v40   ;;  %919 = vperm.xlu0 %1571, %v741_v49  }
  0x69   :  { %1565 = vset.pattern.permute.xlu1 %v1622_v2  ;;  %929 = vperm.xlu0 %1571, %v743_v52  }
  0x6a   :  { %843 = vperm.xlu1 %1565, %v731_v40  }
  0x6d   :  { %976 = vperm.xlu0 %1571, %v762_v57   ;;  %v774_v57 = vld [vmem:[%s2403_s10 + $0x60] sm:$0xff] }
  0x6e   :  { %1566 = vset.pattern.permute.xlu1 %v1623_v7 }
  0x6f   :  { %794 = vperm.xlu1 %1566, %v732_v41  }
  0x71   :  { %986 = vperm.xlu0 %1571, %v764_v3  }
  0x73   :  { %1567 = vset.pattern.permute.xlu1 %v1622_v2 }
  0x74   :  { %847 = vperm.xlu1 %1567, %v732_v41  }
  0x75   :  { %996 = vperm.xlu0 %1571, %v766_v14  }
  0x78   :  { %851 = vperm.xlu1 %1567, %v733_v36   ;;  %v742_v36 = vld [vmem:[%s2401_s8 + $0x20] sm:$0xff] }
  0x79   :  { %1006 = vperm.xlu0 %1571, %v768_v25  }
  0x7c   :  { %1568 = vset.pattern.permute.xlu1 %v1623_v7 }
  0x7d   :  { %909 = vperm.xlu1 %1568, %v739_v42   ;;  %1016 = vperm.xlu0 %1571, %v770_v35  }
  0x81   :  { %v172_v43 = vpop.permute.xlu1 %171  ;;  %v1845_v44 = vpop.permute.xlu0 %179  ;;  %809 = vperm.xlu1 %1568, %v735_v45  }
  0x82   :  { %v213_v10 = vmul.f32 %v1876_v62, %v172_v43  ;;  %v214_v11 = vmul.f32 %v1878_v63, %v172_v43  ;;  %v217_v40 = vmul.f32 %v1876_v62, %v1845_v44  ;;  %v218_v41 = vmul.f32 %v1878_v63, %v1845_v44  ;;  %v772_v44 = vld [vmem:[%s2403_s10 + $0x50] sm:$0xff] }
  0x83   :  { %1026 = vperm.xlu0 %1571, %v772_v44  }
  0x85   :  { %v176_v47 = vpop.permute.xlu1 %175  ;;  %v1850_v48 = vpop.permute.xlu0 %187  ;;  %1569 = vset.pattern.permute.xlu1 %v1622_v2 }
  0x86   :  { %859 = vperm.xlu1 %1569, %v735_v45   ;;  %v215_v16 = vmul.f32 %v1876_v62, %v176_v47  ;;  %v221_v25 = vmul.f32 %v1876_v62, %v1850_v48 }
  0x87   :  { %1036 = vperm.xlu0 %1571, %v774_v57  }
  0x89   :  { %v1855_v51 = vpop.permute.xlu0 %195 }
  0x8a   :  { %v1861_v53 = vpop.permute.xlu1 %120  ;;  %1570 = vset.pattern.permute.xlu1 %v1623_v7 }
  0x8b   :  { %914 = vperm.xlu1 %1570, %v740_v54   ;;  %v160_v42 = vmul.f32 %v1880_v0, %v1861_v53  ;;  %v161_v43 = vmul.f32 %v1882_v1, %v1861_v53 }
  0x8e   :  { %v106_v60 = vpop.permute.xlu0 %105 }
  0x8f   :  { %v184_v61 = vpop.permute.xlu1 %183  ;;  %v154_v5 = vmul.f32 %v1880_v0, %v106_v60  ;;  %v155_v6 = vmul.f32 %v1882_v1, %v106_v60  ;;  %814 = vperm.xlu1 %1570, %v1761_v17   ;;  %v216_v17 = vmul.f32 %v1878_v63, %v176_v47 }
  0x90   :  { %v219_v37 = vmul.f32 %v1876_v62, %v184_v61  ;;  %v220_v38 = vmul.f32 %v1878_v63, %v184_v61 }
  0x91   :  { %v229_v18 = vadd.f32 %v213_v10, %v154_v5  ;;  %v230_v19 = vadd.f32 %v214_v11, %v155_v6  ;;  %v763_v10 = vld [vmem:[%s2403_s10 + $0x8] sm:$0xff] }
  0x92   :  { %v111_v4 = vpop.permute.xlu0 %110  ;;  %v235_v50 = vadd.f32 %v219_v37, %v160_v42  ;;  %v236_v52 = vadd.f32 %v220_v38, %v161_v43  ;;  %v771_v43 = vld [vmem:[%s2403_s10 + $0x48] sm:$0xff] }
  0x93   :  { %v156_v12 = vmul.f32 %v1880_v0, %v111_v4  ;;  %v157_v13 = vmul.f32 %v1882_v1, %v111_v4  ;;  %819 = vperm.xlu1 %1570, %v737_v9  }
  0x94   :  { %v248_v8 = vpop.permute.xlu1 %247 }
  0x95   :  { %v285_v21 = vadd.f32 %v248_v8, %v229_v18  ;;  %v286_v22 = vadd.f32 %v248_v8, %v230_v19  ;;  %v231_v23 = vadd.f32 %v215_v16, %v156_v12  ;;  %v232_v24 = vadd.f32 %v216_v17, %v157_v13  ;;  %v776_v8 = vld [vmem:[%s2403_s10 + $0x70] sm:$0xff]  ;;  %v101_v13 = vld [vmem:[%s2399_s6] sm:$0xff]  ;;  %v765_v17 = vld [vmem:[%s2403_s10 + $0x18] sm:$0xff] }
  0x96   :  { %v116_v15 = vpop.permute.xlu0 %115  ;;  %1046 = vperm.xlu0 %1571, %v776_v8  }
  0x97   :  { %1572 = vset.pattern.permute.xlu1 %v1622_v2  ;;  %v301_v30 = vmax.f32 %v285_v21, 0.0  ;;  %v302_v33 = vmax.f32 %v286_v22, 0.0  ;;  %v158_v45 = vmul.f32 %v1880_v0, %v116_v15  ;;  %v159_v46 = vmul.f32 %v1882_v1, %v116_v15  ;;  %v780_v21 = vld [vmem:[%s2405_s12] sm:$0xff] }
  0x98   :  { %v1902_v20 = vpop.permute.xlu1 %125  ;;  %867 = vperm.xlu1 %1572, %v737_v9  }
  0x99   :  { %v233_v55 = vadd.f32 %v217_v40, %v158_v45  ;;  %v234_v56 = vadd.f32 %v218_v41, %v159_v46  ;;  %v226_v40 = vmul.f32 %v1878_v63, %v1855_v51 }
  0x9a   :  { %v253_v26 = vpop.permute.xlu0 %252  ;;  %641 = vperm.xlu0 %1571, %v101_v13   ;;  %v67_v13 = vld [vmem:[%s2396_s3] sm:$0xff] }
  0x9b   :  { %v287_v27 = vadd.f32 %v253_v26, %v231_v23  ;;  %v288_v28 = vadd.f32 %v253_v26, %v232_v24  ;;  %v767_v24 = vld [vmem:[%s2403_s10 + $0x28] sm:$0xff]  ;;  %v222_v26 = vmul.f32 %v1878_v63, %v1850_v48 }
  0x9c   :  { %v131_v29 = vpop.permute.xlu1 %130  ;;  %1573 = vset.pattern.permute.xlu1 %v1623_v7  ;;  %v744_v7 = vld [vmem:[%s2401_s8 + $0x30] sm:$0xff] }
  0x9d   :  { %v303_v32 = vmax.f32 %v287_v27, 0.0  ;;  %v304_v34 = vmax.f32 %v288_v28, 0.0  ;;  %924 = vperm.xlu1 %1573, %v742_v36   ;;  %v164_v18 = vmul.f32 %v1880_v0, %v131_v29  ;;  %v165_v19 = vmul.f32 %v1882_v1, %v131_v29 }
  0x9e   :  { %v263_v49 = vpop.permute.xlu0 %262  ;;  %v162_v27 = vmul.f32 %v1880_v0, %v1902_v20  ;;  %v163_v28 = vmul.f32 %v1882_v1, %v1902_v20  ;;  %1297 = vperm.xlu0 %1571, %v780_v21   ;;  %v225_v20 = vmul.f32 %v1876_v62, %v1855_v51  ;;  %v72_v21 = vld [vmem:[%s2396_s3 + $0x28] sm:$0xff] }
  0x9f   :  { %v1451_v2 = vpack.c.bf16 %v304_v34, %v302_v33  ;;  %v1453_v39 = vpack.c.bf16 %v303_v32, %v301_v30  ;;  %v291_v53 = vadd.f32 %v263_v49, %v235_v50  ;;  %v292_v54 = vadd.f32 %v263_v49, %v236_v52  ;;  %v769_v34 = vld [vmem:[%s2403_s10 + $0x38] sm:$0xff] }
  0xa0   :  { %v237_v35 = vadd.f32 %v221_v25, %v162_v27  ;;  %v238_v36 = vadd.f32 %v222_v26, %v163_v28  ;;  %v76_v25 = vld [vmem:[%s2396_s3 + $0x48] sm:$0xff]  ;;  %v77_v26 = vld [vmem:[%s2396_s3 + $0x50] sm:$0xff]  ;;  %v78_v27 = vld [vmem:[%s2396_s3 + $0x58] sm:$0xff] }
  0xa1   :  { %v192_v47 = vpop.permute.xlu1 %191  ;;  %1452 = vmatprep.subr.bf16.mxu0 %v1451_v2  ;;  %934 = vperm.xlu1 %1573, %v744_v7   ;;  %v307_v3 = vmax.f32 %v291_v53, 0.0  ;;  %v308_v4 = vmax.f32 %v292_v54, 0.0  ;;  %v79_v28 = vld [vmem:[%s2396_s3 + $0x60] sm:$0xff] }
  0xa2   :  { %1454 = vmatpush1.bf16.msra.mxu0 %v1453_v39  ;;  %v223_v14 = vmul.f32 %v1876_v62, %v192_v47  ;;  %v224_v15 = vmul.f32 %v1878_v63, %v192_v47  ;;  %v273_v29 = vpop.permute.xlu0 %272 }
  0xa4   :  { %v239_v22 = vadd.f32 %v223_v14, %v164_v18  ;;  %v240_v23 = vadd.f32 %v224_v15, %v165_v19  ;;  %v102_v14 = vld [vmem:[%s2399_s6 + $0x8] sm:$0xff]  ;;  %v70_v18 = vld [vmem:[%s2396_s3 + $0x18] sm:$0xff]  ;;  %v71_v19 = vld [vmem:[%s2396_s3 + $0x20] sm:$0xff] }
  0xa5   :  { %939 = vperm.xlu1 %1573, %v745_v59   ;;  %v68_v15 = vld [vmem:[%s2396_s3 + $0x8] sm:$0xff] }
  0xa6   :  { %v258_v58 = vpop.permute.xlu1 %257  ;;  %v295_v32 = vadd.f32 %v273_v29, %v239_v22  ;;  %v296_v33 = vadd.f32 %v273_v29, %v240_v23  ;;  %v73_v22 = vld [vmem:[%s2396_s3 + $0x30] sm:$0xff]  ;;  %v74_v23 = vld [vmem:[%s2396_s3 + $0x38] sm:$0xff]  ;;  %v80_v29 = vld [vmem:[%s2396_s3 + $0x68] sm:$0xff] }
  0xa7   :  { %v289_v60 = vadd.f32 %v258_v58, %v233_v55  ;;  %v290_v61 = vadd.f32 %v258_v58, %v234_v56  ;;  %v773_v55 = vld [vmem:[%s2403_s10 + $0x58] sm:$0xff] }
  0xa8   :  { %v311_v41 = vmax.f32 %v295_v32, 0.0  ;;  %v312_v42 = vmax.f32 %v296_v33, 0.0  ;;  %v82_v32 = vld [vmem:[%s2396_s3 + $0x78] sm:$0xff] }
  0xa9   :  { %v305_v5 = vmax.f32 %v289_v60, 0.0  ;;  %v306_v6 = vmax.f32 %v290_v61, 0.0  ;;  %981 = vperm.xlu1 %1573, %v763_v10  }
  0xaa   :  { %v136_v9 = vpop.permute.xlu1 %135 }
  0xab   :  { %v1455_v11 = vpack.c.bf16 %v308_v4, %v306_v6  ;;  %v1457_v12 = vpack.c.bf16 %v307_v3, %v305_v5  ;;  %v166_v48 = vmul.f32 %v1880_v0, %v136_v9  ;;  %v167_v37 = vmul.f32 %v1882_v1, %v136_v9  ;;  %v775_v4 = vld [vmem:[%s2403_s10 + $0x68] sm:$0xff] }
  0xad   :  { %1456 = vmatprep.subr.bf16.mxu0 %v1455_v11  ;;  %991 = vperm.xlu1 %1573, %v765_v17   ;;  %v241_v7 = vadd.f32 %v225_v20, %v166_v48  ;;  %v242_v50 = vadd.f32 %v226_v40, %v167_v37  ;;  %v69_v17 = vld [vmem:[%s2396_s3 + $0x10] sm:$0xff]  ;;  %v2084_v37 = vpop.permute.xlu0 %839 }
  0xae   :  { %v141_v16 = vpop.permute.xlu1 %140  ;;  %1458 = vmatpush1.bf16.msra.mxu0 %v1457_v12  ;;  %v777_v12 = vld [vmem:[%s2403_s10 + $0x78] sm:$0xff] }
  0xaf   :  { %v168_v52 = vmul.f32 %v1880_v0, %v141_v16  ;;  %v169_v53 = vmul.f32 %v1882_v1, %v141_v16  ;;  %v781_v16 = vld [vmem:[%s2405_s12 + $0x8] sm:$0xff] }
  0xb1   :  { %1001 = vperm.xlu1 %1573, %v767_v24   ;;  %v75_v24 = vld [vmem:[%s2396_s3 + $0x40] sm:$0xff] }
  0xb3   :  { %v200_v30 = vpop.permute.xlu1 %199 }
  0xb4   :  { %v227_v45 = vmul.f32 %v1876_v62, %v200_v30  ;;  %v228_v46 = vmul.f32 %v1878_v63, %v200_v30  ;;  %v81_v30 = vld [vmem:[%s2396_s3 + $0x70] sm:$0xff] }
  0xb5   :  { %1011 = vperm.xlu1 %1573, %v769_v34  }
  0xb6   :  { %v243_v58 = vadd.f32 %v227_v45, %v168_v52  ;;  %v244_v59 = vadd.f32 %v228_v46, %v169_v53 }
  0xb8   :  { %v268_v38 = vpop.permute.xlu1 %267 }
  0xb9   :  { %v293_v2 = vadd.f32 %v268_v38, %v237_v35  ;;  %v294_v39 = vadd.f32 %v268_v38, %v238_v36  ;;  %1021 = vperm.xlu1 %1573, %v771_v43  }
  0xbb   :  { %v309_v47 = vmax.f32 %v293_v2, 0.0  ;;  %v310_v44 = vmax.f32 %v294_v39, 0.0  ;;  %v2088_v2 = vpop.permute.xlu0 %855 }
  0xbc   :  { %v278_v49 = vpop.permute.xlu1 %277 }
  0xbd   :  { %v1459_v51 = vpack.c.bf16 %v312_v42, %v310_v44  ;;  %v1461_v54 = vpack.c.bf16 %v311_v41, %v309_v47  ;;  %v297_v56 = vadd.f32 %v278_v49, %v241_v7  ;;  %v298_v57 = vadd.f32 %v278_v49, %v242_v50  ;;  %1031 = vperm.xlu1 %1573, %v773_v55  }
  0xbf   :  { %1460 = vmatprep.subr.bf16.mxu0 %v1459_v51  ;;  %v313_v5 = vmax.f32 %v297_v56, 0.0  ;;  %v314_v6 = vmax.f32 %v298_v57, 0.0  ;;  %v2092_v20 = vpop.permute.xlu0 %863 }
  0xc0   :  { %v283_v60 = vpop.permute.xlu1 %282  ;;  %1462 = vmatpush1.bf16.msra.mxu0 %v1461_v54 }
  0xc1   :  { %v299_v61 = vadd.f32 %v283_v60, %v243_v58  ;;  %v300_v3 = vadd.f32 %v283_v60, %v244_v59  ;;  %1041 = vperm.xlu1 %1573, %v775_v4  }
  0xc3   :  { %v315_v8 = vmax.f32 %v299_v61, 0.0  ;;  %v316_v9 = vmax.f32 %v300_v3, 0.0  ;;  %v320_v41 = vpop.permute.xlu0 %319 }
  0xc4   :  { %v325_v33 = vpop.permute.xlu1 %324 }
  0xc5   :  { %v1463_v10 = vpack.c.bf16 %v316_v9, %v314_v6  ;;  %v1465_v11 = vpack.c.bf16 %v315_v8, %v313_v5  ;;  %1051 = vperm.xlu1 %1573, %v777_v12  }
  0xc7   :  { %1464 = vmatprep.subr.bf16.mxu0 %v1463_v10  ;;  %v330_v43 = vpop.permute.xlu0 %329 }
  0xc8   :  { %1466 = vmatpush1.bf16.msra.mxu0 %v1465_v11  ;;  %v335_v34 = vpop.permute.xlu1 %334 }
  0xc9   :  { %646 = vperm.xlu1 %1573, %v102_v14  }
  0xcb   :  { %1419 = vmatmul.mubr.msk.f32.vlgmr.msra.gmra.mrb[0].mxu0 %vm397_vm0, %v67_v13  ;;  %v340_v44 = vpop.permute.xlu0 %339 }
  0xcc   :  { %516 = vmatprep.mubr.f32.mxu0 %v1624_v31  ;;  %v345_v35 = vpop.permute.xlu1 %344 }
  0xcd   :  { %1302 = vperm.xlu1 %1573, %v781_v16  }
  0xcf   :  { %1420 = vmatmul.mubr.msk.f32.gmra.mrb[2].mxu0 %vm397_vm0, %v68_v15  ;;  %v350_v56 = vpop.permute.xlu0 %349 }
  0xd0   :  { %522 = vmatprep.mubr.f32.mxu0 %v1624_v31  ;;  %v2080_v36 = vpop.permute.xlu1 %354 }
  0xd3   :  { %1421 = vmatmul.mubr.msk.f32.gmra.mrb[4].mxu0 %vm397_vm0, %v69_v17  ;;  %v360_v11 = vpop.permute.xlu0 %359 }
  0xd4   :  { %528 = vmatprep.mubr.f32.mxu0 %v1624_v31  ;;  %v2082_v48 = vpop.permute.xlu1 %364 }
  0xd7   :  { %1422 = vmatmul.mubr.msk.f32.gmra.mrb[6].mxu0 %vm397_vm0, %v70_v18 }
  0xd8   :  { %534 = vmatprep.mubr.f32.mxu0 %v1624_v31  ;;  %v2086_v38 = vpop.permute.xlu1 %374 }
  0xdb   :  { %1423 = vmatmul.mubr.msk.f32.gmra.mrb[8].mxu0 %vm397_vm0, %v71_v19 }
  0xdc   :  { %540 = vmatprep.mubr.f32.mxu0 %v1624_v31  ;;  %v2090_v39 = vpop.permute.xlu1 %384 }
  0xdf   :  { %1424 = vmatmul.mubr.msk.f32.gmra.mrb[10].mxu0 %vm397_vm0, %v72_v21 }
  0xe0   :  { %546 = vmatprep.mubr.f32.mxu0 %v1624_v31  ;;  %v2094_v40 = vpop.permute.xlu1 %394 }
  0xe3   :  { %1425 = vmatmul.mubr.msk.f32.gmra.mrb[12].mxu0 %vm397_vm0, %v73_v22 }
  0xe4   :  { %552 = vmatprep.mubr.f32.mxu0 %v1624_v31  ;;  %v2096_v42 = vpop.permute.xlu1 %789 }
  0xe7   :  { %1426 = vmatmul.mubr.msk.f32.gmra.mrb[14].mxu0 %vm397_vm0, %v74_v23 }
  0xe8   :  { %558 = vmatprep.mubr.f32.mxu0 %v1624_v31 }
  0xe9   :  { %v2098_v45 = vpop.permute.xlu1 %843 }
  0xeb   :  { %1427 = vmatmul.mubr.msk.f32.gmra.mrb[16].mxu0 %vm397_vm0, %v75_v24 }
  0xec   :  { %564 = vmatprep.mubr.f32.mxu0 %v1624_v31 }
  0xee   :  { %v2100_v46 = vpop.permute.xlu1 %794 }
  0xef   :  { %1428 = vmatmul.mubr.msk.f32.gmra.mrb[18].mxu0 %vm397_vm0, %v76_v25  ;;  %v370_v25 = vpop.permute.xlu0 %369 }
  0xf0   :  { %570 = vmatprep.mubr.f32.mxu0 %v1624_v31 }
  0xf3   :  { %1429 = vmatmul.mubr.msk.f32.gmra.mrb[20].mxu0 %vm397_vm0, %v77_v26  ;;  %v2102_v53 = vpop.permute.xlu1 %847 }
  0xf4   :  { %576 = vmatprep.mubr.f32.mxu0 %v1624_v31 }
  0xf7   :  { %1430 = vmatmul.mubr.msk.f32.gmra.mrb[22].mxu0 %vm397_vm0, %v78_v27  ;;  %v2104_v6 = vpop.permute.xlu1 %851 }
  0xf8   :  { %582 = vmatprep.mubr.f32.mxu0 %v1624_v31 }
  0xfb   :  { %1431 = vmatmul.mubr.msk.f32.gmra.mrb[24].mxu0 %vm397_vm0, %v79_v28 }
  0xfc   :  { %588 = vmatprep.mubr.f32.mxu0 %v1624_v31  ;;  %v2106_v21 = vpop.permute.xlu1 %909 }
  0xff   :  { %1432 = vmatmul.mubr.msk.f32.gmra.mrb[26].mxu0 %vm397_vm0, %v80_v29 }
 0x100   :  { %594 = vmatprep.mubr.f32.mxu0 %v1624_v31  ;;  %v2108_v29 = vpop.permute.xlu1 %809 }
 0x103   :  { %1433 = vmatmul.mubr.msk.f32.gmra.mrb[28].mxu0 %vm397_vm0, %v81_v30 }
 0x104   :  { %600 = vmatprep.mubr.f32.mxu0 %v1624_v31 }
 0x107   :  { %1434 = vmatmul.mubr.msk.f32.gmra.mrb[30].mxu0 %vm397_vm0, %v82_v32 }
 0x108   :  { %1369 = vmatprep.mubr.f32.mxu0 %v1624_v31 }
 0x19e   :  { %v512_v47 = vpop.f32.mrb[0].mxu0 }
 0x19f   :  { %v514_v49 = vpop.f32.mrb[1].mxu0  ;;  %v513_v7 = vadd.f32 %v512_v47, %v320_v41 }
 0x1a0   :  { %v515_v50 = vadd.f32 %v514_v49, %v320_v41 }
 0x1a1   :  { %v607_v57 = vmax.f32 %v513_v7, 0.0  ;;  %v2110_v7 = vpop.permute.xlu0 %379 }
 0x1a2   :  { %v518_v52 = vpop.f32.mrb[2].mxu0  ;;  %v608_v59 = vmax.f32 %v515_v50, 0.0 }
 0x1a3   :  { %v519_v51 = vadd.f32 %v518_v52, %v325_v33  ;;  %v520_v54 = vpop.f32.mrb[3].mxu0 }
 0x1a4   :  { %v521_v55 = vadd.f32 %v520_v54, %v325_v33  ;;  %v2112_v54 = vpop.permute.xlu1 %859 }
 0x1a5   :  { %v609_v58 = vmax.f32 %v519_v51, 0.0 }
 0x1a6   :  { %v610_v60 = vmax.f32 %v521_v55, 0.0  ;;  %v524_v61 = vpop.f32.mrb[4].mxu0 }
 0x1a7   :  { %v526_v3 = vpop.f32.mrb[5].mxu0  ;;  %v1469_v4 = vpack.c.bf16 %v609_v58, %v607_v57  ;;  %v525_v8 = vadd.f32 %v524_v61, %v330_v43 }
 0x1a8   :  { %v1467_v5 = vpack.c.bf16 %v610_v60, %v608_v59  ;;  %v527_v9 = vadd.f32 %v526_v3, %v330_v43  ;;  %v2116_v60 = vpop.permute.xlu0 %389 }
 0x1a9   :  { %v611_v15 = vmax.f32 %v525_v8, 0.0 }
 0x1aa   :  { %v530_v10 = vpop.f32.mrb[6].mxu0  ;;  %1468 = vmatprep.subr.bf16.mxu1 %v1467_v5  ;;  %v612_v17 = vmax.f32 %v527_v9, 0.0  ;;  %v2118_v9 = vpop.permute.xlu1 %914 }
 0x1ab   :  { %v531_v12 = vadd.f32 %v530_v10, %v335_v34  ;;  %v532_v13 = vpop.f32.mrb[7].mxu0  ;;  %1470 = vmatpush1.bf16.msra.mxu1 %v1469_v4 }
 0x1ac   :  { %v533_v14 = vadd.f32 %v532_v13, %v335_v34 }
 0x1ad   :  { %v613_v16 = vmax.f32 %v531_v12, 0.0 }
 0x1ae   :  { %v614_v18 = vmax.f32 %v533_v14, 0.0  ;;  %v536_v19 = vpop.f32.mrb[8].mxu0 }
 0x1af   :  { %v1473_v22 = vpack.c.bf16 %v613_v16, %v611_v15  ;;  %v538_v23 = vpop.f32.mrb[9].mxu0  ;;  %v537_v26 = vadd.f32 %v536_v19, %v340_v44  ;;  %v785_v16 = vpop.permute.xlu0 %784 }
 0x1b0   :  { %v1471_v24 = vpack.c.bf16 %v614_v18, %v612_v17  ;;  %v539_v27 = vadd.f32 %v538_v23, %v340_v44  ;;  %v2122_v19 = vpop.permute.xlu1 %814 }
 0x1b1   :  { %v615_v34 = vmax.f32 %v537_v26, 0.0 }
 0x1b2   :  { %v542_v28 = vpop.f32.mrb[10].mxu0  ;;  %1472 = vmatprep.subr.bf16.mxu1 %v1471_v24  ;;  %v616_v43 = vmax.f32 %v539_v27, 0.0 }
 0x1b3   :  { %v543_v30 = vadd.f32 %v542_v28, %v345_v35  ;;  %v544_v32 = vpop.f32.mrb[11].mxu0  ;;  %1474 = vmatpush1.bf16.msra.mxu1 %v1473_v22 }
 0x1b4   :  { %v545_v33 = vadd.f32 %v544_v32, %v345_v35 }
 0x1b5   :  { %v617_v41 = vmax.f32 %v543_v30, 0.0 }
 0x1b6   :  { %v618_v47 = vmax.f32 %v545_v33, 0.0  ;;  %v548_v49 = vpop.f32.mrb[12].mxu0 }
 0x1b7   :  { %v1477_v50 = vpack.c.bf16 %v617_v41, %v615_v34  ;;  %v550_v52 = vpop.f32.mrb[13].mxu0  ;;  %v549_v44 = vadd.f32 %v548_v49, %v350_v56  ;;  %v870_v34 = vmul.f32 %v2084_v37, %v1876_v62  ;;  %v822_v41 = vmul.f32 %v785_v16, %v1880_v0 }
 0x1b8   :  { %v1475_v51 = vpack.c.bf16 %v618_v47, %v616_v43  ;;  %v551_v55 = vadd.f32 %v550_v52, %v350_v56  ;;  %v823_v49 = vmul.f32 %v785_v16, %v1882_v1 }
 0x1b9   :  { %v619_v61 = vmax.f32 %v549_v44, 0.0 }
 0x1ba   :  { %v554_v57 = vpop.f32.mrb[14].mxu0  ;;  %1476 = vmatprep.subr.bf16.mxu1 %v1475_v51  ;;  %v620_v4 = vmax.f32 %v551_v55, 0.0 }
 0x1bb   :  { %v555_v58 = vadd.f32 %v554_v57, %v2080_v36  ;;  %v556_v59 = vpop.f32.mrb[15].mxu0  ;;  %1478 = vmatpush1.bf16.msra.mxu1 %v1477_v50  ;;  %v2130_v50 = vpop.permute.xlu1 %819 }
 0x1bc   :  { %v557_v35 = vadd.f32 %v556_v59, %v2080_v36 }
 0x1bd   :  { %v621_v3 = vmax.f32 %v555_v58, 0.0  ;;  %v886_v58 = vadd.f32 %v870_v34, %v822_v41 }
 0x1be   :  { %v622_v5 = vmax.f32 %v557_v35, 0.0  ;;  %v560_v8 = vpop.f32.mrb[16].mxu0 }
 0x1bf   :  { %v1481_v10 = vpack.c.bf16 %v621_v3, %v619_v61  ;;  %v562_v12 = vpop.f32.mrb[17].mxu0  ;;  %v561_v13 = vadd.f32 %v560_v8, %v360_v11  ;;  %v2136_v61 = vmul.f32 %v2088_v2, %v1876_v62  ;;  %v2157_v16 = vpop.permute.xlu1 %867 }
 0x1c0   :  { %v1479_v56 = vpack.c.bf16 %v622_v5, %v620_v4  ;;  %v563_v14 = vadd.f32 %v562_v12, %v360_v11  ;;  %v800_v11 = vpop.permute.xlu0 %799  ;;  %v873_v12 = vmul.f32 %v2098_v45, %v1878_v63 }
 0x1c1   :  { %v623_v22 = vmax.f32 %v561_v13, 0.0  ;;  %v2152_v13 = vmul.f32 %v2092_v20, %v1878_v63 }
 0x1c2   :  { %v566_v15 = vpop.f32.mrb[18].mxu0  ;;  %1480 = vmatprep.subr.bf16.mxu1 %v1479_v56  ;;  %v624_v24 = vmax.f32 %v563_v14, 0.0  ;;  %v824_v14 = vmul.f32 %v2096_v42, %v1880_v0 }
 0x1c3   :  { %v567_v17 = vadd.f32 %v566_v15, %v2082_v48  ;;  %v568_v36 = vpop.f32.mrb[19].mxu0  ;;  %1482 = vmatpush1.bf16.msra.mxu1 %v1481_v10  ;;  %v2146_v10 = vmul.f32 %v2092_v20, %v1876_v62  ;;  %v828_v15 = vmul.f32 %v800_v11, %v1880_v0 }
 0x1c4   :  { %v569_v18 = vadd.f32 %v568_v36, %v2082_v48  ;;  %v871_v48 = vmul.f32 %v2084_v37, %v1878_v63  ;;  %v872_v37 = vmul.f32 %v2098_v45, %v1876_v62  ;;  %v905_v3 = vpop.permute.xlu0 %904  ;;  %v829_v36 = vmul.f32 %v800_v11, %v1882_v1 }
 0x1c5   :  { %v625_v23 = vmax.f32 %v567_v17, 0.0  ;;  %v825_v17 = vmul.f32 %v2096_v42, %v1882_v1  ;;  %v2163_v45 = vadd.f32 %v905_v3, %v886_v58  ;;  %v827_v42 = vmul.f32 %v2100_v46, %v1882_v1 }
 0x1c6   :  { %v626_v26 = vmax.f32 %v569_v18, 0.0  ;;  %v572_v27 = vpop.f32.mrb[20].mxu0  ;;  %v887_v4 = vadd.f32 %v871_v48, %v823_v49  ;;  %v826_v11 = vmul.f32 %v2100_v46, %v1880_v0  ;;  %v2187_v46 = vpop.permute.xlu1 %924 }
 0x1c7   :  { %v1485_v28 = vpack.c.bf16 %v625_v23, %v623_v22  ;;  %v574_v30 = vpop.f32.mrb[21].mxu0  ;;  %v573_v33 = vadd.f32 %v572_v27, %v370_v25  ;;  %v877_v22 = vmul.f32 %v2104_v6, %v1878_v63 }
 0x1c8   :  { %v1483_v32 = vpack.c.bf16 %v626_v26, %v624_v24  ;;  %v575_v43 = vadd.f32 %v574_v30, %v370_v25  ;;  %v2168_v23 = vadd.f32 %v905_v3, %v887_v4  ;;  %v888_v24 = vadd.f32 %v872_v37, %v824_v14 }
 0x1c9   :  { %v627_v55 = vmax.f32 %v573_v33, 0.0  ;;  %v889_v30 = vadd.f32 %v873_v12, %v825_v17  ;;  %v874_v33 = vmul.f32 %v2102_v53, %v1876_v62  ;;  %v832_v17 = vmul.f32 %v2108_v29, %v1880_v0 }
 0x1ca   :  { %v578_v47 = vpop.f32.mrb[22].mxu0  ;;  %1484 = vmatprep.subr.bf16.mxu1 %v1483_v32  ;;  %v628_v59 = vmax.f32 %v575_v43, 0.0  ;;  %v876_v43 = vmul.f32 %v2104_v6, %v1876_v62  ;;  %v881_v6 = vmul.f32 %v2112_v54, %v1878_v63 }
 0x1cb   :  { %v579_v52 = vadd.f32 %v578_v47, %v2086_v38  ;;  %v580_v51 = vpop.f32.mrb[23].mxu0  ;;  %1486 = vmatpush1.bf16.msra.mxu1 %v1485_v28  ;;  %v875_v28 = vmul.f32 %v2102_v53, %v1878_v63  ;;  %v2183_v47 = vadd.f32 %v2106_v21, %v888_v24  ;;  %v935_v24 = vpop.permute.xlu1 %934 }
 0x1cc   :  { %v581_v44 = vadd.f32 %v580_v51, %v2086_v38  ;;  %v2142_v38 = vmul.f32 %v2088_v2, %v1878_v63  ;;  %v958_v51 = vmax.f32 %v2163_v45, 0.0 }
 0x1cd   :  { %v629_v57 = vmax.f32 %v579_v52, 0.0  ;;  %v891_v58 = vadd.f32 %v875_v28, %v827_v42  ;;  %v960_v3 = vmax.f32 %v2183_v47, 0.0  ;;  %v885_v42 = vmul.f32 %v2157_v16, %v1878_v63 }
 0x1ce   :  { %v630_v25 = vmax.f32 %v581_v44, 0.0  ;;  %v584_v35 = vpop.f32.mrb[24].mxu0  ;;  %v893_v44 = vadd.f32 %v877_v22, %v829_v36  ;;  %v884_v63 = vmul.f32 %v2157_v16, %v1876_v62 }
 0x1cf   :  { %v1489_v5 = vpack.c.bf16 %v629_v57, %v627_v55  ;;  %v586_v8 = vpop.f32.mrb[25].mxu0  ;;  %v585_v2 = vadd.f32 %v584_v35, %v2110_v7  ;;  %v833_v57 = vmul.f32 %v2108_v29, %v1882_v1 }
 0x1d0   :  { %v1487_v56 = vpack.c.bf16 %v630_v25, %v628_v59  ;;  %v587_v18 = vadd.f32 %v586_v8, %v2110_v7  ;;  %v805_v7 = vpop.permute.xlu0 %804  ;;  %v959_v25 = vmax.f32 %v2168_v23, 0.0  ;;  %v890_v8 = vadd.f32 %v874_v33, %v826_v11 }
 0x1d1   :  { %v631_v34 = vmax.f32 %v585_v2, 0.0  ;;  %v830_v35 = vmul.f32 %v805_v7, %v1880_v0  ;;  %v831_v37 = vmul.f32 %v805_v7, %v1882_v1 }
 0x1d2   :  { %v590_v20 = vpop.f32.mrb[26].mxu0  ;;  %1488 = vmatprep.subr.bf16.mxu1 %v1487_v56  ;;  %v632_v48 = vmax.f32 %v587_v18, 0.0  ;;  %v880_v18 = vmul.f32 %v2112_v54, %v1876_v62  ;;  %v946_v33 = vadd.f32 %v2118_v9, %v890_v8 }
 0x1d3   :  { %v591_v26 = vadd.f32 %v590_v20, %v2090_v39  ;;  %v592_v27 = vpop.f32.mrb[27].mxu0  ;;  %1490 = vmatpush1.bf16.msra.mxu1 %v1489_v5  ;;  %v892_v5 = vadd.f32 %v876_v43, %v828_v15  ;;  %v897_v20 = vadd.f32 %v881_v6, %v833_v57  ;;  %v947_v15 = vadd.f32 %v2118_v9, %v891_v58 }
 0x1d4   :  { %v593_v32 = vadd.f32 %v592_v27, %v2090_v39  ;;  %v945_v39 = vadd.f32 %v2106_v21, %v889_v30  ;;  %v920_v4 = vpop.permute.xlu0 %919  ;;  %v895_v23 = vadd.f32 %v2142_v38, %v831_v37  ;;  %v837_v27 = vmul.f32 %v2130_v50, %v1882_v1 }
 0x1d5   :  { %v633_v41 = vmax.f32 %v591_v26, 0.0  ;;  %v949_v2 = vadd.f32 %v920_v4, %v893_v44  ;;  %v948_v30 = vadd.f32 %v920_v4, %v892_v5  ;;  %v896_v11 = vadd.f32 %v880_v18, %v832_v17  ;;  %v748_v17 = vld [vmem:[%s2402_s9 + $0x10] sm:$0xff]  ;;  %v751_v18 = vld [vmem:[%s2402_s9 + $0x28] sm:$0xff] }
 0x1d6   :  { %v634_v49 = vmax.f32 %v593_v32, 0.0  ;;  %v596_v52 = vpop.f32.mrb[28].mxu0  ;;  %v961_v14 = vmax.f32 %v945_v39, 0.0  ;;  %v834_v38 = vmul.f32 %v2122_v19, %v1880_v0  ;;  %v894_v43 = vadd.f32 %v2136_v61, %v830_v35  ;;  %v940_v39 = vpop.permute.xlu1 %939 }
 0x1d7   :  { %v1493_v55 = vpack.c.bf16 %v633_v41, %v631_v34  ;;  %v598_v53 = vpop.f32.mrb[29].mxu0  ;;  %v597_v21 = vadd.f32 %v596_v52, %v2116_v60  ;;  %v965_v7 = vmax.f32 %v949_v2, 0.0  ;;  %v951_v47 = vadd.f32 %v2187_v46, %v895_v23  ;;  %v747_v2 = vld [vmem:[%s2402_s9 + $0x8] sm:$0xff]  ;;  %v756_v23 = vld [vmem:[%s2402_s9 + $0x50] sm:$0xff] }
 0x1d8   :  { %v1491_v59 = vpack.c.bf16 %v634_v49, %v632_v48  ;;  %v599_v12 = vadd.f32 %v598_v53, %v2116_v60  ;;  %v835_v60 = vmul.f32 %v2122_v19, %v1882_v1  ;;  %v930_v41 = vpop.permute.xlu0 %929  ;;  %v836_v1 = vmul.f32 %v2130_v50, %v1880_v0  ;;  %v99_v19 = vld [vmem:[%s2398_s5] sm:$0xff] }
 0x1d9   :  { %v635_v26 = vmax.f32 %v597_v21, 0.0  ;;  %v953_v48 = vadd.f32 %v930_v41, %v897_v20  ;;  %v963_v49 = vmax.f32 %v947_v15, 0.0  ;;  %v901_v9 = vadd.f32 %v885_v42, %v837_v27  ;;  %v752_v20 = vld [vmem:[%s2402_s9 + $0x30] sm:$0xff]  ;;  %v753_v15 = vld [vmem:[%s2402_s9 + $0x38] sm:$0xff] }
 0x1da   :  { %v602_v56 = vpop.f32.mrb[30].mxu0  ;;  %1492 = vmatprep.subr.bf16.mxu1 %v1491_v59  ;;  %v636_v54 = vmax.f32 %v599_v12, 0.0  ;;  %v899_v52 = vadd.f32 %v2152_v13, %v835_v60  ;;  %v1501_v0 = vpack.c.bf16 %v960_v3, %v958_v51  ;;  %v964_v50 = vmax.f32 %v948_v30, 0.0  ;;  %v100_v51 = vld [vmem:[%s2398_s5 + $0x8] sm:$0xff]  ;;  %v760_v27 = vld [vmem:[%s2402_s9 + $0x70] sm:$0xff]  ;;  %v761_v42 = vld [vmem:[%s2402_s9 + $0x78] sm:$0xff] }
 0x1db   :  { %v603_v36 = vadd.f32 %v602_v56, %v2094_v40  ;;  %v604_v45 = vpop.f32.mrb[31].mxu0  ;;  %1494 = vmatpush1.bf16.msra.mxu1 %v1493_v55  ;;  %v952_v44 = vadd.f32 %v930_v41, %v896_v11  ;;  %v962_v62 = vmax.f32 %v946_v33, 0.0  ;;  %v950_v61 = vadd.f32 %v2187_v46, %v894_v43  ;;  %v755_v60 = vld [vmem:[%s2402_s9 + $0x48] sm:$0xff] }
 0x1dc   :  { %v605_v22 = vadd.f32 %v604_v45, %v2094_v40  ;;  %v1499_v40 = vpack.c.bf16 %v961_v14, %v959_v25  ;;  %v967_v16 = vmax.f32 %v951_v47, 0.0  ;;  %v898_v55 = vadd.f32 %v2146_v10, %v834_v38  ;;  %v746_v14 = vld [vmem:[%s2402_s9] sm:$0xff] }
 0x1dd   :  { %v637_v29 = vmax.f32 %v603_v36, 0.0  ;;  %v900_v53 = vadd.f32 %v884_v63, %v836_v1  ;;  %v955_v13 = vadd.f32 %v935_v24, %v899_v52  ;;  %v957_v57 = vadd.f32 %v940_v39, %v901_v9  ;;  %v749_v36 = vld [vmem:[%s2402_s9 + $0x18] sm:$0xff]  ;;  %v750_v45 = vld [vmem:[%s2402_s9 + $0x20] sm:$0xff] }
 0x1de   :  { %v638_v28 = vmax.f32 %v605_v22, 0.0  ;;  %v1503_v6 = vpack.c.bf16 %v965_v7, %v963_v49  ;;  %v969_v58 = vmax.f32 %v953_v48, 0.0  ;;  %v1505_v59 = vpack.c.bf16 %v964_v50, %v962_v62  ;;  %v754_v22 = vld [vmem:[%s2402_s9 + $0x40] sm:$0xff] }
 0x1df   :  { %v1497_v32 = vpack.c.bf16 %v637_v29, %v635_v26  ;;  %v966_v25 = vmax.f32 %v950_v61, 0.0  ;;  %v968_v46 = vmax.f32 %v952_v44, 0.0  ;;  %v954_v35 = vadd.f32 %v935_v24, %v898_v55  ;;  %v757_v24 = vld [vmem:[%s2402_s9 + $0x58] sm:$0xff]  ;;  %v758_v26 = vld [vmem:[%s2402_s9 + $0x60] sm:$0xff]  ;;  %v759_v29 = vld [vmem:[%s2402_s9 + $0x68] sm:$0xff] }
 0x1e0   :  { %v1495_v34 = vpack.c.bf16 %v638_v28, %v636_v54  ;;  %v956_v37 = vadd.f32 %v940_v39, %v900_v53  ;;  %v971_v10 = vmax.f32 %v955_v13, 0.0  ;;  %v973_v21 = vmax.f32 %v957_v57, 0.0  ;;  %v977_v54 = vpop.permute.xlu0 %976  ;;  %v982_v28 = vpop.permute.xlu1 %981 }
 0x1e1   :  { %v1507_v3 = vpack.c.bf16 %v969_v58, %v967_v16  ;;  %v1509_v4 = vpack.c.bf16 %v968_v46, %v966_v25  ;;  %v970_v5 = vmax.f32 %v954_v35, 0.0 }
 0x1e2   :  { %1496 = vmatprep.subr.bf16.mxu1 %v1495_v34  ;;  %v972_v8 = vmax.f32 %v956_v37, 0.0  ;;  %v1511_v12 = vpack.c.bf16 %v973_v21, %v971_v10 }
 0x1e3   :  { %1498 = vmatpush1.bf16.msra.mxu1 %v1497_v32 }
 0x1e4   :  { %1500 = vmatprep.subr.bf16.mxu1 %v1499_v40  ;;  %v1513_v56 = vpack.c.bf16 %v972_v8, %v970_v5  ;;  %v987_v30 = vpop.permute.xlu0 %986  ;;  %v992_v7 = vpop.permute.xlu1 %991 }
 0x1e6   :  { %714 = vmatmul.mubr.f32.vlgmr.msra.gmra.mrb[0].mxu1 %v99_v19 }
 0x1e7   :  { %1502 = vmatpush1.bf16.msra.mxu1 %v1501_v0  ;;  %719 = vmatprep.mubr.f32.mxu1 %v1624_v31 }
 0x1e8   :  { %1504 = vmatprep.subr.bf16.mxu1 %v1503_v6  ;;  %v997_v32 = vpop.permute.xlu0 %996  ;;  %v2312_v40 = vpop.permute.xlu1 %1001 }
 0x1ea   :  { %720 = vmatmul.mubr.f32.gmra.mrb[2].mxu1 %v100_v51 }
 0x1eb   :  { %1506 = vmatpush1.bf16.msra.mxu1 %v1505_v59  ;;  %1166 = vmatprep.mubr.f32.mxu1 %v1624_v31 }
 0x1ec   :  { %1508 = vmatprep.subr.bf16.mxu1 %v1507_v3  ;;  %v2314_v11 = vpop.permute.xlu0 %1006  ;;  %v2316_v33 = vpop.permute.xlu1 %1011 }
 0x1ef   :  { %1510 = vmatpush1.bf16.msra.mxu1 %v1509_v4 }
 0x1f0   :  { %1512 = vmatprep.subr.bf16.mxu1 %v1511_v12  ;;  %v2318_v38 = vpop.permute.xlu0 %1016  ;;  %v2320_v34 = vpop.permute.xlu1 %1021 }
 0x1f3   :  { %1514 = vmatpush1.bf16.msra.mxu1 %v1513_v56 }
 0x1f4   :  { %v2322_v41 = vpop.permute.xlu0 %1026  ;;  %v2324_v1 = vpop.permute.xlu1 %1031 }
 0x1f6   :  { %1435 = vmatmul.mubr.msk.f32.vlgmr.msra.gmra.mrb[4].mxu1 %vm397_vm0, %v746_v14 }
 0x1f7   :  { %1172 = vmatprep.mubr.f32.mxu1 %v1624_v31 }
 0x1f8   :  { %v2326_v63 = vpop.permute.xlu0 %1036  ;;  %v2328_v43 = vpop.permute.xlu1 %1041 }
 0x1fa   :  { %1436 = vmatmul.mubr.msk.f32.gmra.mrb[6].mxu1 %vm397_vm0, %v747_v2 }
 0x1fb   :  { %1178 = vmatprep.mubr.f32.mxu1 %v1624_v31 }
 0x1fc   :  { %v2330_v47 = vpop.permute.xlu0 %1046  ;;  %v2332_v48 = vpop.permute.xlu1 %1051 }
 0x1fe   :  { %1437 = vmatmul.mubr.msk.f32.gmra.mrb[8].mxu1 %vm397_vm0, %v748_v17 }
 0x1ff   :  { %1184 = vmatprep.mubr.f32.mxu1 %v1624_v31 }
 0x200   :  { %v642_v49 = vpop.permute.xlu0 %641  ;;  %v647_v0 = vpop.permute.xlu1 %646 }
 0x202   :  { %1438 = vmatmul.mubr.msk.f32.gmra.mrb[10].mxu1 %vm397_vm0, %v749_v36 }
 0x203   :  { %1190 = vmatprep.mubr.f32.mxu1 %v1624_v31 }
 0x206   :  { %1439 = vmatmul.mubr.msk.f32.gmra.mrb[12].mxu1 %vm397_vm0, %v750_v45 }
 0x207   :  { %1196 = vmatprep.mubr.f32.mxu1 %v1624_v31 }
 0x20a   :  { %1440 = vmatmul.mubr.msk.f32.gmra.mrb[14].mxu1 %vm397_vm0, %v751_v18 }
 0x20b   :  { %1202 = vmatprep.mubr.f32.mxu1 %v1624_v31 }
 0x20e   :  { %1441 = vmatmul.mubr.msk.f32.gmra.mrb[16].mxu1 %vm397_vm0, %v752_v20 }
 0x20f   :  { %1208 = vmatprep.mubr.f32.mxu1 %v1624_v31 }
 0x212   :  { %1442 = vmatmul.mubr.msk.f32.gmra.mrb[18].mxu1 %vm397_vm0, %v753_v15 }
 0x213   :  { %1214 = vmatprep.mubr.f32.mxu1 %v1624_v31 }
 0x216   :  { %1443 = vmatmul.mubr.msk.f32.gmra.mrb[20].mxu1 %vm397_vm0, %v754_v22 }
 0x217   :  { %1220 = vmatprep.mubr.f32.mxu1 %v1624_v31 }
 0x21a   :  { %1444 = vmatmul.mubr.msk.f32.gmra.mrb[22].mxu1 %vm397_vm0, %v755_v60 }
 0x21b   :  { %1226 = vmatprep.mubr.f32.mxu1 %v1624_v31 }
 0x21e   :  { %1445 = vmatmul.mubr.msk.f32.gmra.mrb[24].mxu1 %vm397_vm0, %v756_v23 }
 0x21f   :  { %1232 = vmatprep.mubr.f32.mxu1 %v1624_v31 }
 0x222   :  { %1446 = vmatmul.mubr.msk.f32.gmra.mrb[26].mxu1 %vm397_vm0, %v757_v24 }
 0x223   :  { %1238 = vmatprep.mubr.f32.mxu1 %v1624_v31 }
 0x226   :  { %1447 = vmatmul.mubr.msk.f32.gmra.mrb[28].mxu1 %vm397_vm0, %v758_v26 }
 0x227   :  { %1244 = vmatprep.mubr.f32.mxu1 %v1624_v31 }
 0x22a   :  { %1448 = vmatmul.mubr.msk.f32.gmra.mrb[30].mxu1 %vm397_vm0, %v759_v29 }
 0x22b   :  { %1250 = vmatprep.mubr.f32.mxu1 %v1624_v31 }
 0x22e   :  { %1449 = vmatmul.mubr.msk.f32.gmra.mrb[32].mxu1 %vm397_vm0, %v760_v27 }
 0x22f   :  { %1256 = vmatprep.mubr.f32.mxu1 %v1624_v31 }
 0x232   :  { %1450 = vmatmul.mubr.msk.f32.gmra.mrb[34].mxu1 %vm397_vm0, %v761_v42 }
 0x2b9   :  { %v715_v52 = vpop.f32.mrb[0].mxu1 }
 0x2ba   :  { %v716_v9 = vadd.f32 %v715_v52, %v642_v49  ;;  %v717_v39 = vpop.f32.mrb[1].mxu1 }
 0x2bb   :  { %v718_v19 = vadd.f32 %v717_v39, %v642_v49 }
 0x2bc   :  { %726 = vst [vmem:[#allocation2] sm:$0xff] %v716_v9 }
 0x2bd   :  { %727 = vst [vmem:[#allocation2 + $0x8] sm:$0xff] %v718_v19  ;;  %v721_v50 = vpop.f32.mrb[2].mxu1 }
 0x2be   :  { %v722_v44 = vadd.f32 %v721_v50, %v647_v0  ;;  %v723_v62 = vpop.f32.mrb[3].mxu1 }
 0x2bf   :  { %v724_v61 = vadd.f32 %v723_v62, %v647_v0 }
 0x2c0   :  { %728 = vst [vmem:[#allocation2 + $0x10] sm:$0xff] %v722_v44 }
 0x2c1   :  { %729 = vst [vmem:[#allocation2 + $0x18] sm:$0xff] %v724_v61 }
 0x2c9   :  { %v1168_v16 = vpop.f32.mrb[4].mxu1 }
 0x2ca   :  { %v1170_v55 = vpop.f32.mrb[5].mxu1  ;;  %v1169_v53 = vadd.f32 %v1168_v16, %v977_v54 }
 0x2cb   :  { %v1171_v13 = vadd.f32 %v1170_v55, %v977_v54 }
 0x2cc   :  { %v1263_v59 = vmax.f32 %v1169_v53, 0.0 }
 0x2cd   :  { %v1174_v57 = vpop.f32.mrb[6].mxu1  ;;  %v1264_v46 = vmax.f32 %v1171_v13, 0.0 }
 0x2ce   :  { %v1175_v6 = vadd.f32 %v1174_v57, %v982_v28  ;;  %v1176_v58 = vpop.f32.mrb[7].mxu1 }
 0x2cf   :  { %v1177_v51 = vadd.f32 %v1176_v58, %v982_v28 }
 0x2d0   :  { %v1265_v25 = vmax.f32 %v1175_v6, 0.0 }
 0x2d1   :  { %v1266_v35 = vmax.f32 %v1177_v51, 0.0  ;;  %v1180_v37 = vpop.f32.mrb[8].mxu1 }
 0x2d2   :  { %v1517_v10 = vpack.c.bf16 %v1265_v25, %v1263_v59  ;;  %v1182_v21 = vpop.f32.mrb[9].mxu1  ;;  %v1181_v4 = vadd.f32 %v1180_v37, %v987_v30 }
 0x2d3   :  { %v1515_v3 = vpack.c.bf16 %v1266_v35, %v1264_v46  ;;  %v1183_v5 = vadd.f32 %v1182_v21, %v987_v30 }
 0x2d4   :  { %v1267_v2 = vmax.f32 %v1181_v4, 0.0 }
 0x2d5   :  { %v1186_v8 = vpop.f32.mrb[10].mxu1  ;;  %1516 = vmatprep.subr.bf16.mxu0 %v1515_v3  ;;  %v1268_v36 = vmax.f32 %v1183_v5, 0.0 }
 0x2d6   :  { %v1187_v12 = vadd.f32 %v1186_v8, %v992_v7  ;;  %v1188_v56 = vpop.f32.mrb[11].mxu1  ;;  %1518 = vmatpush1.bf16.msra.mxu0 %v1517_v10 }
 0x2d7   :  { %v1189_v14 = vadd.f32 %v1188_v56, %v992_v7 }
 0x2d8   :  { %v1269_v17 = vmax.f32 %v1187_v12, 0.0 }
 0x2d9   :  { %v1270_v45 = vmax.f32 %v1189_v14, 0.0  ;;  %v1192_v18 = vpop.f32.mrb[12].mxu1 }
 0x2da   :  { %v1521_v20 = vpack.c.bf16 %v1269_v17, %v1267_v2  ;;  %v1194_v15 = vpop.f32.mrb[13].mxu1  ;;  %v1193_v60 = vadd.f32 %v1192_v18, %v997_v32 }
 0x2db   :  { %v1519_v22 = vpack.c.bf16 %v1270_v45, %v1268_v36  ;;  %v1195_v23 = vadd.f32 %v1194_v15, %v997_v32 }
 0x2dc   :  { %v1271_v42 = vmax.f32 %v1193_v60, 0.0 }
 0x2dd   :  { %v1198_v24 = vpop.f32.mrb[14].mxu1  ;;  %1520 = vmatprep.subr.bf16.mxu0 %v1519_v22  ;;  %v1272_v28 = vmax.f32 %v1195_v23, 0.0 }
 0x2de   :  { %v1199_v26 = vadd.f32 %v1198_v24, %v2312_v40  ;;  %v1200_v29 = vpop.f32.mrb[15].mxu1  ;;  %1522 = vmatpush1.bf16.msra.mxu0 %v1521_v20 }
 0x2df   :  { %v1201_v27 = vadd.f32 %v1200_v29, %v2312_v40 }
 0x2e0   :  { %v1273_v54 = vmax.f32 %v1199_v26, 0.0 }
 0x2e1   :  { %v1274_v30 = vmax.f32 %v1201_v27, 0.0  ;;  %v1204_v7 = vpop.f32.mrb[16].mxu1 }
 0x2e2   :  { %v1525_v49 = vpack.c.bf16 %v1273_v54, %v1271_v42  ;;  %v1205_v52 = vadd.f32 %v1204_v7, %v2314_v11  ;;  %v1206_v9 = vpop.f32.mrb[17].mxu1 }
 0x2e3   :  { %v1523_v39 = vpack.c.bf16 %v1274_v30, %v1272_v28  ;;  %v1207_v32 = vadd.f32 %v1206_v9, %v2314_v11 }
 0x2e4   :  { %v1275_v44 = vmax.f32 %v1205_v52, 0.0 }
 0x2e5   :  { %v1210_v19 = vpop.f32.mrb[18].mxu1  ;;  %1524 = vmatprep.subr.bf16.mxu0 %v1523_v39  ;;  %v1276_v61 = vmax.f32 %v1207_v32, 0.0 }
 0x2e6   :  { %v1211_v0 = vadd.f32 %v1210_v19, %v2316_v33  ;;  %v1212_v50 = vpop.f32.mrb[19].mxu1  ;;  %1526 = vmatpush1.bf16.msra.mxu0 %v1525_v49 }
 0x2e7   :  { %v1213_v40 = vadd.f32 %v1212_v50, %v2316_v33 }
 0x2e8   :  { %v1277_v62 = vmax.f32 %v1211_v0, 0.0 }
 0x2e9   :  { %v1278_v16 = vmax.f32 %v1213_v40, 0.0  ;;  %v1216_v55 = vpop.f32.mrb[20].mxu1 }
 0x2ea   :  { %v1529_v53 = vpack.c.bf16 %v1277_v62, %v1275_v44  ;;  %v1218_v13 = vpop.f32.mrb[21].mxu1  ;;  %v1217_v6 = vadd.f32 %v1216_v55, %v2318_v38  ;;  %v779_v62 = vld [vmem:[%s2404_s11 + $0x8] sm:$0xff] }
 0x2eb   :  { %v1527_v57 = vpack.c.bf16 %v1278_v16, %v1276_v61  ;;  %v1219_v11 = vadd.f32 %v1218_v13, %v2318_v38 }
 0x2ec   :  { %v1279_v25 = vmax.f32 %v1217_v6, 0.0 }
 0x2ed   :  { %v1222_v58 = vpop.f32.mrb[22].mxu1  ;;  %1528 = vmatprep.subr.bf16.mxu0 %v1527_v57  ;;  %v1280_v35 = vmax.f32 %v1219_v11, 0.0 }
 0x2ee   :  { %v1223_v51 = vadd.f32 %v1222_v58, %v2320_v34  ;;  %v1224_v59 = vpop.f32.mrb[23].mxu1  ;;  %1530 = vmatpush1.bf16.msra.mxu0 %v1529_v53 }
 0x2ef   :  { %v1225_v33 = vadd.f32 %v1224_v59, %v2320_v34 }
 0x2f0   :  { %v1281_v46 = vmax.f32 %v1223_v51, 0.0 }
 0x2f1   :  { %v1282_v37 = vmax.f32 %v1225_v33, 0.0  ;;  %v1228_v10 = vpop.f32.mrb[24].mxu1 }
 0x2f2   :  { %v1533_v21 = vpack.c.bf16 %v1281_v46, %v1279_v25  ;;  %v1230_v3 = vpop.f32.mrb[25].mxu1  ;;  %v1229_v5 = vadd.f32 %v1228_v10, %v2322_v41 }
 0x2f3   :  { %v1531_v4 = vpack.c.bf16 %v1282_v37, %v1280_v35  ;;  %v1231_v38 = vadd.f32 %v1230_v3, %v2322_v41 }
 0x2f4   :  { %v1283_v14 = vmax.f32 %v1229_v5, 0.0 }
 0x2f5   :  { %v1234_v8 = vpop.f32.mrb[26].mxu1  ;;  %1532 = vmatprep.subr.bf16.mxu0 %v1531_v4  ;;  %v1284_v17 = vmax.f32 %v1231_v38, 0.0 }
 0x2f6   :  { %v1235_v12 = vadd.f32 %v1234_v8, %v2324_v1  ;;  %v1236_v56 = vpop.f32.mrb[27].mxu1  ;;  %1534 = vmatpush1.bf16.msra.mxu0 %v1533_v21 }
 0x2f7   :  { %v1237_v34 = vadd.f32 %v1236_v56, %v2324_v1 }
 0x2f8   :  { %v1285_v2 = vmax.f32 %v1235_v12, 0.0 }
 0x2f9   :  { %v1286_v36 = vmax.f32 %v1237_v34, 0.0  ;;  %v1240_v45 = vpop.f32.mrb[28].mxu1 }
 0x2fa   :  { %v1537_v18 = vpack.c.bf16 %v1285_v2, %v1283_v14  ;;  %v1242_v20 = vpop.f32.mrb[29].mxu1  ;;  %v1241_v22 = vadd.f32 %v1240_v45, %v2326_v63 }
 0x2fb   :  { %v1535_v15 = vpack.c.bf16 %v1286_v36, %v1284_v17  ;;  %v1243_v41 = vadd.f32 %v1242_v20, %v2326_v63 }
 0x2fc   :  { %v1287_v26 = vmax.f32 %v1241_v22, 0.0 }
 0x2fd   :  { %v1246_v60 = vpop.f32.mrb[30].mxu1  ;;  %1536 = vmatprep.subr.bf16.mxu0 %v1535_v15  ;;  %v1288_v27 = vmax.f32 %v1243_v41, 0.0 }
 0x2fe   :  { %v1247_v23 = vadd.f32 %v1246_v60, %v2328_v43  ;;  %v1248_v24 = vpop.f32.mrb[31].mxu1  ;;  %1538 = vmatpush1.bf16.msra.mxu0 %v1537_v18 }
 0x2ff   :  { %v1249_v1 = vadd.f32 %v1248_v24, %v2328_v43 }
 0x300   :  { %v1289_v29 = vmax.f32 %v1247_v23, 0.0 }
 0x301   :  { %v1290_v42 = vmax.f32 %v1249_v1, 0.0  ;;  %v1252_v54 = vpop.f32.mrb[32].mxu1 }
 0x302   :  { %v1541_v28 = vpack.c.bf16 %v1289_v29, %v1287_v26  ;;  %v1254_v30 = vpop.f32.mrb[33].mxu1  ;;  %v1253_v49 = vadd.f32 %v1252_v54, %v2330_v47 }
 0x303   :  { %v1539_v7 = vpack.c.bf16 %v1290_v42, %v1288_v27  ;;  %v1255_v63 = vadd.f32 %v1254_v30, %v2330_v47  ;;  %v778_v47 = vld [vmem:[%s2404_s11] sm:$0xff] }
 0x304   :  { %v1291_v32 = vmax.f32 %v1253_v49, 0.0 }
 0x305   :  { %v1258_v52 = vpop.f32.mrb[34].mxu1  ;;  %1540 = vmatprep.subr.bf16.mxu0 %v1539_v7  ;;  %v1292_v0 = vmax.f32 %v1255_v63, 0.0 }
 0x306   :  { %v1259_v9 = vadd.f32 %v1258_v52, %v2332_v48  ;;  %v1260_v39 = vpop.f32.mrb[35].mxu1  ;;  %1542 = vmatpush1.bf16.msra.mxu0 %v1541_v28 }
 0x307   :  { %v1261_v43 = vadd.f32 %v1260_v39, %v2332_v48 }
 0x308   :  { %v1293_v19 = vmax.f32 %v1259_v9, 0.0 }
 0x309   :  { %v1294_v50 = vmax.f32 %v1261_v43, 0.0 }
 0x30a   :  { %v1545_v40 = vpack.c.bf16 %v1293_v19, %v1291_v32 }
 0x30b   :  { %v1543_v44 = vpack.c.bf16 %v1294_v50, %v1292_v0 }
 0x30d   :  { %1544 = vmatprep.subr.bf16.mxu0 %v1543_v44 }
 0x30e   :  { %1546 = vmatpush1.bf16.msra.mxu0 %v1545_v40 }
 0x311   :  { %1370 = vmatmul.mubr.f32.vlgmr.msra.gmra.mrb[32].mxu0 %v778_v47 }
 0x312   :  { %1375 = vmatprep.mubr.f32.mxu0 %v1624_v31 }
 0x315   :  { %1376 = vmatmul.mubr.f32.gmra.mrb[34].mxu0 %v779_v62 }
 0x316   :  { %1585 = shalt.err (!%p1582_p4)
}
 0x317   :  { %s1586_s19 = scalar_lea.hbm %s2406_s13, 512 }
 0x318   :  { %p1587_p5 = scmp.ne.s32.totalorder %s2406_s13, %s1586_s19  ;;  %p1590_p6 = scmp.lt.u32.totalorder %s1586_s19, %s2406_s13 }
 0x31a   :  { %p1592_p7 = pnand %p1590_p6, %p1587_p5 }
 0x31c   :  { %1595 = shalt.err (!%p1592_p7)
}
 0x31d   :  { %s1626_s21 = smov 256   ;;  %s1627_s10 = smov 16   ;;  %v1298_v31 = vpop.permute.xlu0 %1297  ;;  %v1303_v53 = vpop.permute.xlu1 %1302 }
 0x31e   :  { %1397 = dma.vmem_to_hbm [thread:$0]  %s1392_s15, 512, %s2406_s13, [#allocation3], %s1626_s21, %s1626_s21, %s1627_s10  }
 0x31f   :  { %s1628_s7 = smov [#allocation4]  }
 0x320   :  { %s1403_s6 = sshll.u32 %s1628_s7, 4  ;;  %s1404_s6 = int_to_ptr.vmem [resolvable:$true] %s1403_s6 }
 0x321   :  { %s1596_s3 = scalar_lea.vmem %s1404_s6, 512  ;;  %p1601_p9 = scmp.lt.s32.totalorder %s1404_s6, %s1404_s6 }
 0x322   :  { %p1597_p8 = scmp.ne.s32.totalorder %s1404_s6, %s1596_s3  ;;  %p1602_p10 = scmp.lt.s32.totalorder %s1596_s3, %s1596_s3 }
 0x324   :  { %p1603_p11 = por %p1602_p10, %p1601_p9 }
 0x326   :  { %p1604_p12 = pnand %p1603_p11, %p1597_p8 }
 0x3e4   :  { %v1371_v48 = vpop.f32.mrb[32].mxu0 }
 0x3e5   :  { %v1372_v61 = vadd.f32 %v1371_v48, %v1298_v31  ;;  %v1373_v16 = vpop.f32.mrb[33].mxu0 }
 0x3e6   :  { %v1374_v55 = vadd.f32 %v1373_v16, %v1298_v31 }
 0x3e7   :  { %1382 = vst [vmem:[#allocation4] sm:$0xff] %v1372_v61 }
 0x3e8   :  { %1383 = vst [vmem:[#allocation4 + $0x8] sm:$0xff] %v1374_v55  ;;  %v1377_v13 = vpop.f32.mrb[34].mxu0 }
 0x3e9   :  { %v1378_v57 = vadd.f32 %v1377_v13, %v1303_v53  ;;  %v1379_v6 = vpop.f32.mrb[35].mxu0 }
 0x3ea   :  { %v1380_v11 = vadd.f32 %v1379_v6, %v1303_v53 }
 0x3eb   :  { %1384 = vst [vmem:[#allocation4 + $0x10] sm:$0xff] %v1378_v57 }
 0x3ec   :  { %1385 = vst [vmem:[#allocation4 + $0x18] sm:$0xff] %v1380_v11 }
 0x3ed   :  { %1607 = shalt.err (!%p1604_p12)
}
 0x3ee   :  { %s1608_s12 = scalar_lea.hbm %s2407_s14, 512 }
 0x3ef   :  { %p1609_p13 = scmp.ne.s32.totalorder %s2407_s14, %s1608_s12  ;;  %p1612_p0 = scmp.lt.u32.totalorder %s1608_s12, %s2407_s14 }
 0x3f1   :  { %p1614_p1 = pnand %p1612_p0, %p1609_p13 }
 0x3f3   :  { %1617 = shalt.err (!%p1614_p1)
}
 0x3f4   :  { %1409 = dma.vmem_to_hbm [thread:$0]  %s1404_s6, 512, %s2407_s14, [#allocation5], %s1626_s21, %s1626_s21, %s1627_s10  }
 0x3f5   :  { %1618 = dma.done.wait [#allocation3], 512  }
 0x3f6   :  { %1619 = vsyncadd [#allocation3], 4294966784 }
 0x3f7   :  { %1620 = dma.done.wait [#allocation5], 512  }
 0x3f8   :  { %1621 = vsyncadd [#allocation5], 4294966784 }
 0x3f9   :  { %1416 = vsyncpa [#allocation3], 1 }
 0x3fa   :  { %1417 = vsyncpa [#allocation5], 1 }

</bundles_post_ra>
